<compile_context>
chip_gen: v7x
topology: tpu7x:2x2x1
jax: 0.10.0
libtpu: 0.0.40
codegen_flags: <defaults>
</compile_context>

<pallas_src>
import functools

import jax
import jax.numpy as jnp
from jax.experimental import pallas as pl
from jax.experimental.pallas import tpu as pltpu


def _round_up(x, m):
    return ((x + m - 1) // m) * m


def co_attention_kernel(v_ref, a_ref, h_ref, w1b_ref, w2_ref, vw_ref, wlb_ref,
                        out_ref):
    # Per-grid-step shapes (one batch tile of TB rows per step):
    #   v_ref   : (TB, N, Dv)     streamed bf16
    #   a_ref   : (TB, M, Da)     streamed bf16
    #   h_ref   : (TB, H)         streamed bf16
    #   w1b_ref : (H+1, 2U)   rows [0:H] = [W1v^T | W1a^T], row [H] = [b1v+b2v | b1a+b2a]
    #   w2_ref  : (Dv+Da, U)  rows [0:Dv] = W2v^T, rows [Dv:] = W2a^T
    #   vw_ref  : (2, U)      row 0 = Vv, row 1 = Va (score projections)
    #   wlb_ref : (Dv+Da+1,H) [0:Dv]=Wl[:,:Dv]^T, [Dv:Dv+Da]=Wl[:,Dv:]^T, [-1]=bl
    #   out_ref : (TB, W_pad) lane-dense packed [ctx | align_v | align_a | 0-pad]
    TB, N, Dv = v_ref.shape
    M, Da = a_ref.shape[1], a_ref.shape[2]
    H = h_ref.shape[1]
    U = w2_ref.shape[1]

    h = h_ref[...].astype(jnp.float32)                                   # (TB, H)
    # Fused query projection for BOTH attention branches (one MXU dispatch);
    # b1+b2 biases folded into the last weight row.
    pq = (jnp.dot(h, w1b_ref[0:H, :], preferred_element_type=jnp.float32)
          + w1b_ref[H:H + 1, :])                                         # (TB, 2U)
    vw = vw_ref[...]                                                     # (2, U)

    def branch(mem_ref, w2_t, pq_b, vw_b):
        # mem_ref: (TB, T, D); w2_t: (D, U); pq_b: (TB, U); vw_b: (1, U)
        mem = mem_ref[...].astype(jnp.float32)                           # (TB, T, D)
        T, D = mem.shape[1], mem.shape[2]
        # Shared key projection over all TB*T memory rows in ONE matmul.
        keys = jnp.dot(mem.reshape(TB * T, D), w2_t,
                       preferred_element_type=jnp.float32).reshape(TB, T, U)
        e = jnp.tanh(keys + pq_b[:, None, :])                            # (TB, T, U)
        # 1-wide score projection: VPU multiply + lane reduce (no 1-col matmul).
        score = jnp.sum(e * vw_b, axis=-1)                               # (TB, T)
        # Max-stabilized softmax over the T memory positions; exact divide.
        score = score - jnp.max(score, axis=-1, keepdims=True)
        p = jnp.exp(score)
        align = p / jnp.sum(p, axis=-1, keepdims=True)                   # (TB, T)
        # Attended memory: broadcast-multiply + sum over T (VPU + XLU),
        # replacing TB tiny bmm's.
        attn = jnp.sum(align[:, :, None] * mem, axis=1)                  # (TB, D)
        return align, attn

    align_v, v_attn = branch(v_ref, w2_ref[0:Dv, :], pq[:, 0:U], vw[0:1, :])
    align_a, a_attn = branch(a_ref, w2_ref[Dv:Dv + Da, :], pq[:, U:2 * U],
                             vw[1:2, :])

    # ctx = Linear(N+M, H)(cat([v_attn, a_attn])) with the weight pre-split at Dv
    # and pre-transposed -> two contiguous dots + a bias row.
    ctx = (jnp.dot(v_attn, wlb_ref[0:Dv, :], preferred_element_type=jnp.float32)
           + jnp.dot(a_attn, wlb_ref[Dv:Dv + Da, :],
                     preferred_element_type=jnp.float32)
           + wlb_ref[Dv + Da:Dv + Da + 1, :])                            # (TB, H)

    # Lane-dense padded output block: one unmasked full-block zero store, then
    # disjoint static lane-slice stores (no in-kernel concatenate / XLU shuffle).
    out_ref[...] = jnp.zeros_like(out_ref)
    out_ref[:, 0:H] = ctx.astype(out_ref.dtype)
    out_ref[:, H:H + N] = align_v.astype(out_ref.dtype)
    out_ref[:, H + N:H + N + M] = align_a.astype(out_ref.dtype)


def pack_params(params):
    """One-time repacking of the 14 nn.Linear weights/biases into 4 TPU-friendly
    arrays (pre-transposed to (in, out), branch-fused, biases folded).  In a
    real model this is done once at parameter-load time, not per forward call."""
    (w1v, b1v, w2v, b2v, vwv, vbv,
     w1a, b1a, w2a, b2a, vwa, vba, wl, bl) = params
    del vbv, vba  # adding a constant to every score is softmax-invariant
    Dv, Da = w2v.shape[1], w2a.shape[1]
    assert wl.shape[1] == Dv + Da, (
        "Co_Attention requires visual_units + semantic_units == N + M "
        "(self.layer = Linear(N + M, hidden) consumes cat([v_attn, a_attn]))")
    # Fused query-projection weight with folded (b1 + b2) bias row: (H+1, 2U)
    w1b = jnp.concatenate(
        [jnp.concatenate([w1v.T, w1a.T], axis=1),
         jnp.concatenate([b1v + b2v, b1a + b2a], axis=1)], axis=0)
    # Stacked, pre-transposed memory (key) projections: (Dv+Da, U)
    w2 = jnp.concatenate([w2v.T, w2a.T], axis=0)
    # Score-projection rows: (2, U)
    vw = jnp.concatenate([vwv, vwa], axis=0)
    # Output layer, pre-split at Dv, pre-transposed, bias appended: (Dv+Da+1, H)
    wlb = jnp.concatenate([wl[:, :Dv].T, wl[:, Dv:].T, bl], axis=0)
    return w1b, w2, vw, wlb


@functools.partial(jax.jit, static_argnames=("block_b", "stream_dtype"))
def co_attention(v, a, hidden_state, packed, *, block_b=None,
                 stream_dtype=jnp.bfloat16):
    w1b, w2, vw, wlb = packed
    B, N, Dv = v.shape
    _, M, Da = a.shape
    H = hidden_state.shape[1]
    U = w2.shape[1]
    W = H + N + M
    W_pad = _round_up(W, 128)          # lane-dense output writeback

    # Batch tile: multiple of 8 sublanes.  Production sizing: sweep TB upward
    # toward the scoped VMEM limit (per-step double-buffered footprint is about
    # 2*TB*(N*Dv + M*Da + H)*2B + 2*TB*W_pad*4B plus the resident weights);
    # re-derive against 64 MiB physical VMEM on v7x, and keep >= 2 grid steps
    # there so both TensorCores get work.
    if block_b is None:
        block_b = min(256, _round_up(B, 8))
    TB = max(8, _round_up(block_b, 8))
    B_pad = _round_up(B, TB)

    # Stream activations in bf16 (halves dominant HBM bytes); f32 accumulation
    # inside the kernel via preferred_element_type.
    v_s = v.astype(stream_dtype)
    a_s = a.astype(stream_dtype)
    h_s = hidden_state.astype(stream_dtype)
    if B_pad != B:
        pad = B_pad - B
        v_s = jnp.pad(v_s, ((0, pad), (0, 0), (0, 0)))
        a_s = jnp.pad(a_s, ((0, pad), (0, 0), (0, 0)))
        h_s = jnp.pad(h_s, ((0, pad), (0, 0)))

    itm = v_s.dtype.itemsize
    weight_bytes = sum(int(x.size) * x.dtype.itemsize for x in (w1b, w2, vw, wlb))
    cost = pl.CostEstimate(
        flops=2 * B * (H * 2 * U + (N * Dv + M * Da) * U + (N + M) * U
                       + N * Dv + M * Da + (Dv + Da) * H),
        transcendentals=B * ((N + M) * U + (N + M)),
        bytes_accessed=(B_pad * (N * Dv + M * Da + H) * itm
                        + B_pad * W_pad * 4 + weight_bytes),
    )

    # Weights: full-array blocks with a constant block index (DMA'd once, stay
    # VMEM-resident across grid steps) and single-buffered (a second pipeline
    # buffer for a never-changing block is pure VMEM waste).
    def _wspec(shape):
        return pl.BlockSpec(shape, lambda b: (0,) * len(shape),
                            pipeline_mode=pl.Buffered(1))

    out = pl.pallas_call(
        co_attention_kernel,
        out_shape=jax.ShapeDtypeStruct((B_pad, W_pad), jnp.float32),
        grid=(B_pad // TB,),
        in_specs=[
            pl.BlockSpec((TB, N, Dv), lambda b: (b, 0, 0)),
            pl.BlockSpec((TB, M, Da), lambda b: (b, 0, 0)),
            pl.BlockSpec((TB, H), lambda b: (b, 0)),
            _wspec(w1b.shape),
            _wspec(w2.shape),
            _wspec(vw.shape),
            _wspec(wlb.shape),
        ],
        out_specs=pl.BlockSpec((TB, W_pad), lambda b: (b, 0)),
        compiler_params=pltpu.CompilerParams(
            dimension_semantics=("parallel",)),   # batch tiles across TCs (v7x)
        cost_estimate=cost,
    )(v_s, a_s, h_s, w1b, w2, vw, wlb)

    out = out[:B]
    return out[:, :H], out[:, H:H + N], out[:, H + N:H + N + M]


def make_params(key, num_units, visual_units, semantic_units, hidden_size, N, M):
    """Deterministic synthetic parameters, PyTorch nn.Linear layout (out, in).
    Biases are stored as 2-D (1, out)."""
    ks = jax.random.split(key, 8)
    U, H, Dv, Da = num_units, hidden_size, visual_units, semantic_units

    def lin(k, out_f, in_f):
        kw, kb = jax.random.split(k)
        scale = 1.0 / jnp.sqrt(in_f)
        w = jax.random.uniform(kw, (out_f, in_f), jnp.float32, -scale, scale)
        b = jax.random.uniform(kb, (1, out_f), jnp.float32, -scale, scale)
        return w, b

    w1v, b1v = lin(ks[0], U, H)      # visual_attn.W1 : Linear(H  -> U)
    w2v, b2v = lin(ks[1], U, Dv)     # visual_attn.W2 : Linear(Dv -> U)
    vwv, vbv = lin(ks[2], 1, U)      # visual_attn.V  : Linear(U  -> 1)
    w1a, b1a = lin(ks[3], U, H)      # semantic_attn.W1
    w2a, b2a = lin(ks[4], U, Da)     # semantic_attn.W2
    vwa, vba = lin(ks[5], 1, U)      # semantic_attn.V
    wl, bl = lin(ks[6], H, N + M)    # self.layer : Linear(N+M -> H)
    return (w1v, b1v, w2v, b2v, vwv, vbv,
            w1a, b1a, w2a, b2a, vwa, vba,
            wl, bl)


def co_attention_ref(v, a, h, params):
    """Pure-JAX reference (same math as the original module)."""
    (w1v, b1v, w2v, b2v, vwv, vbv,
     w1a, b1a, w2a, b2a, vwa, vba, wl, bl) = params

    def attn(mem, w1, b1, w2, b2, vw, vb):
        pq = h @ w1.T + b1
        keys = jnp.einsum('btd,ud->btu', mem, w2) + b2[:, None, :]
        score = jnp.einsum('btu,ou->bt', jnp.tanh(keys + pq[:, None, :]), vw) + vb[0, 0]
        al = jax.nn.softmax(score, axis=-1)
        return al, jnp.einsum('bt,btd->bd', al, mem)

    al_v, v_at = attn(v, w1v, b1v, w2v, b2v, vwv, vbv)
    al_a, a_at = attn(a, w1a, b1a, w2a, b2a, vwa, vba)
    ctx = jnp.concatenate([v_at, a_at], axis=1) @ wl.T + bl
    return ctx, al_v, al_a


if __name__ == "__main__":
    # Small shapes consistent with the module; Dv + Da == N + M is required by
    # self.layer = Linear(N + M, hidden_size).
    B = 2              # batch_size
    N = 16             # number of visual regions
    M = 8              # number of semantic tags
    Dv = 16            # visual_units
    Da = 8             # semantic_units
    H = 32             # hidden_size
    U = 16             # num_units

    key = jax.random.PRNGKey(0)
    k_v, k_a, k_h, k_p = jax.random.split(key, 4)

    v = jax.random.normal(k_v, (B, N, Dv), jnp.float32)
    a = jax.random.normal(k_a, (B, M, Da), jnp.float32)
    hidden_state = jax.random.normal(k_h, (B, H), jnp.float32)

    params = make_params(k_p, U, Dv, Da, H, N, M)
    packed = pack_params(params)

    ctx, align_v, align_a = co_attention(v, a, hidden_state, packed)
    jax.block_until_ready((ctx, align_v, align_a))

    # The kernel streams v/a/h in bf16 by design; evaluate the pure-JAX
    # reference on the same bf16-quantized inputs (and full f32 matmul
    # precision) so the check isolates the kernel's numerics from the
    # intentional input-streaming quantization.
    q = lambda x: x.astype(jnp.bfloat16).astype(jnp.float32)
    with jax.default_matmul_precision("float32"):
        ctx_r, alv_r, ala_r = co_attention_ref(q(v), q(a), q(hidden_state), params)
        jax.block_until_ready((ctx_r, alv_r, ala_r))

    assert ctx.shape == (B, H) and align_v.shape == (B, N) and align_a.shape == (B, M)
    assert jnp.allclose(align_v, alv_r, atol=1e-2, rtol=1e-2)
    assert jnp.allclose(align_a, ala_r, atol=1e-2, rtol=1e-2)
    assert jnp.allclose(ctx, ctx_r, atol=1e-2, rtol=1e-2)

    print("KERNEL_OK")
</pallas_src>

<mosaic_0001>
module attributes {stable_mosaic.version = 11 : i64} {
  func.func @co_attention_kernel(%arg0: i32, %arg1: memref<8x16x16xbf16, #tpu.memory_space<vmem>>, %arg2: memref<8x8x8xbf16, #tpu.memory_space<vmem>>, %arg3: memref<8x32xbf16, #tpu.memory_space<vmem>>, %arg4: memref<33x32xf32, #tpu.memory_space<vmem>>, %arg5: memref<24x16xf32, #tpu.memory_space<vmem>>, %arg6: memref<2x16xf32, #tpu.memory_space<vmem>>, %arg7: memref<25x32xf32, #tpu.memory_space<vmem>>, %arg8: memref<8x128xf32, #tpu.memory_space<vmem>>) attributes {dimension_semantics = [#tpu.dimension_semantics<parallel>], iteration_bounds = array<i64: 1>, scalar_prefetch = 0 : i64, scratch_operands = 0 : i64, tpu.core_type = #tpu.core_type<tc>, window_params = [{transform_indices = @transform_0, window_bounds = array<i64: 8, 16, 16>}, {transform_indices = @transform_1, window_bounds = array<i64: 8, 8, 8>}, {transform_indices = @transform_2, window_bounds = array<i64: 8, 32>}, {pipeline_mode = #tpu.pipeline_mode<synchronous>, transform_indices = @transform_3, window_bounds = array<i64: 33, 32>}, {pipeline_mode = #tpu.pipeline_mode<synchronous>, transform_indices = @transform_4, window_bounds = array<i64: 24, 16>}, {pipeline_mode = #tpu.pipeline_mode<synchronous>, transform_indices = @transform_5, window_bounds = array<i64: 2, 16>}, {pipeline_mode = #tpu.pipeline_mode<synchronous>, transform_indices = @transform_6, window_bounds = array<i64: 25, 32>}, {transform_indices = @transform_7, window_bounds = array<i64: 8, 128>}]} {
    %c0 = arith.constant 0 : index
    %c0_0 = arith.constant 0 : index
    %0 = vector.load %arg3[%c0, %c0_0] : memref<8x32xbf16, #tpu.memory_space<vmem>>, vector<8x32xbf16>
    %1 = arith.extf %0 : vector<8x32xbf16> to vector<8x32xf32>
    %c0_1 = arith.constant 0 : index
    %c0_2 = arith.constant 0 : index
    %2 = vector.load %arg4[%c0_1, %c0_2] : memref<33x32xf32, #tpu.memory_space<vmem>>, vector<32x32xf32>
    %cst = arith.constant dense<0.000000e+00> : vector<8x32xf32>
    %3 = tpu.matmul %1, %2, %cst {dimension_numbers = #tpu.dot_dimension_numbers<[1], [0], [0], [1], [0, 0, 1, 1], [], []>} : vector<8x32xf32>, vector<32x32xf32>, vector<8x32xf32> -> vector<8x32xf32>
    %c32 = arith.constant 32 : index
    %c0_3 = arith.constant 0 : index
    %4 = vector.load %arg4[%c32, %c0_3] : memref<33x32xf32, #tpu.memory_space<vmem>>, vector<1x32xf32>
    %5 = vector.broadcast %4 : vector<1x32xf32> to vector<8x32xf32>
    %6 = arith.addf %3, %5 : vector<8x32xf32>
    %c0_4 = arith.constant 0 : index
    %c0_5 = arith.constant 0 : index
    %7 = vector.load %arg6[%c0_4, %c0_5] : memref<2x16xf32, #tpu.memory_space<vmem>>, vector<2x16xf32>
    %c0_6 = arith.constant 0 : index
    %c0_7 = arith.constant 0 : index
    %8 = vector.load %arg5[%c0_6, %c0_7] : memref<24x16xf32, #tpu.memory_space<vmem>>, vector<16x16xf32>
    %9 = vector.extract_strided_slice %6 {offsets = [0, 0], sizes = [8, 16], strides = [1, 1]} : vector<8x32xf32> to vector<8x16xf32>
    %10 = vector.extract_strided_slice %7 {offsets = [0, 0], sizes = [1, 16], strides = [1, 1]} : vector<2x16xf32> to vector<1x16xf32>
    %c0_8 = arith.constant 0 : index
    %c0_9 = arith.constant 0 : index
    %c0_10 = arith.constant 0 : index
    %11 = vector.load %arg1[%c0_8, %c0_9, %c0_10] : memref<8x16x16xbf16, #tpu.memory_space<vmem>>, vector<8x16x16xbf16>
    %12 = arith.extf %11 : vector<8x16x16xbf16> to vector<8x16x16xf32>
    %13 = vector.shape_cast %12 : vector<8x16x16xf32> to vector<128x16xf32>
    %cst_11 = arith.constant dense<0.000000e+00> : vector<128x16xf32>
    %14 = tpu.matmul %13, %8, %cst_11 {dimension_numbers = #tpu.dot_dimension_numbers<[1], [0], [0], [1], [0, 0, 1, 1], [], []>} : vector<128x16xf32>, vector<16x16xf32>, vector<128x16xf32> -> vector<128x16xf32>
    %15 = vector.shape_cast %14 : vector<128x16xf32> to vector<8x16x16xf32>
    %16 = vector.shape_cast %9 : vector<8x16xf32> to vector<8x1x16xf32>
    %17 = vector.broadcast %16 : vector<8x1x16xf32> to vector<8x16x16xf32>
    %18 = arith.addf %15, %17 : vector<8x16x16xf32>
    %19 = math.tanh %18 : vector<8x16x16xf32>
    %20 = vector.shape_cast %10 : vector<1x16xf32> to vector<1x1x16xf32>
    %21 = vector.broadcast %20 : vector<1x1x16xf32> to vector<8x16x16xf32>
    %22 = arith.mulf %19, %21 : vector<8x16x16xf32>
    %cst_12 = arith.constant dense<0.000000e+00> : vector<8x16xf32>
    %23 = vector.multi_reduction <add>, %22, %cst_12 [2] : vector<8x16x16xf32> to vector<8x16xf32>
    %cst_13 = arith.constant dense<0xFF800000> : vector<8xf32>
    %24 = vector.multi_reduction <maximumf>, %23, %cst_13 [1] : vector<8x16xf32> to vector<8xf32>
    %25 = vector.shape_cast %24 : vector<8xf32> to vector<8x1xf32>
    %26 = vector.broadcast %25 : vector<8x1xf32> to vector<8x16xf32>
    %27 = arith.subf %23, %26 : vector<8x16xf32>
    %28 = math.exp %27 : vector<8x16xf32>
    %cst_14 = arith.constant dense<0.000000e+00> : vector<8xf32>
    %29 = vector.multi_reduction <add>, %28, %cst_14 [1] : vector<8x16xf32> to vector<8xf32>
    %30 = vector.shape_cast %29 : vector<8xf32> to vector<8x1xf32>
    %31 = vector.broadcast %30 : vector<8x1xf32> to vector<8x16xf32>
    %32 = arith.divf %28, %31 : vector<8x16xf32>
    %33 = vector.shape_cast %32 : vector<8x16xf32> to vector<8x16x1xf32>
    %34 = vector.broadcast %33 : vector<8x16x1xf32> to vector<8x16x16xf32>
    %35 = arith.mulf %34, %12 : vector<8x16x16xf32>
    %cst_15 = arith.constant dense<0.000000e+00> : vector<8x16xf32>
    %36 = vector.multi_reduction <add>, %35, %cst_15 [1] : vector<8x16x16xf32> to vector<8x16xf32>
    %c16 = arith.constant 16 : index
    %c0_16 = arith.constant 0 : index
    %37 = vector.load %arg5[%c16, %c0_16] : memref<24x16xf32, #tpu.memory_space<vmem>>, vector<8x16xf32>
    %38 = vector.extract_strided_slice %6 {offsets = [0, 16], sizes = [8, 16], strides = [1, 1]} : vector<8x32xf32> to vector<8x16xf32>
    %39 = vector.extract_strided_slice %7 {offsets = [1, 0], sizes = [1, 16], strides = [1, 1]} : vector<2x16xf32> to vector<1x16xf32>
    %c0_17 = arith.constant 0 : index
    %c0_18 = arith.constant 0 : index
    %c0_19 = arith.constant 0 : index
    %40 = vector.load %arg2[%c0_17, %c0_18, %c0_19] : memref<8x8x8xbf16, #tpu.memory_space<vmem>>, vector<8x8x8xbf16>
    %41 = arith.extf %40 : vector<8x8x8xbf16> to vector<8x8x8xf32>
    %42 = vector.shape_cast %41 : vector<8x8x8xf32> to vector<64x8xf32>
    %cst_20 = arith.constant dense<0.000000e+00> : vector<64x16xf32>
    %43 = tpu.matmul %42, %37, %cst_20 {dimension_numbers = #tpu.dot_dimension_numbers<[1], [0], [0], [1], [0, 0, 1, 1], [], []>} : vector<64x8xf32>, vector<8x16xf32>, vector<64x16xf32> -> vector<64x16xf32>
    %44 = vector.shape_cast %43 : vector<64x16xf32> to vector<8x8x16xf32>
    %45 = vector.shape_cast %38 : vector<8x16xf32> to vector<8x1x16xf32>
    %46 = vector.broadcast %45 : vector<8x1x16xf32> to vector<8x8x16xf32>
    %47 = arith.addf %44, %46 : vector<8x8x16xf32>
    %48 = math.tanh %47 : vector<8x8x16xf32>
    %49 = vector.shape_cast %39 : vector<1x16xf32> to vector<1x1x16xf32>
    %50 = vector.broadcast %49 : vector<1x1x16xf32> to vector<8x8x16xf32>
    %51 = arith.mulf %48, %50 : vector<8x8x16xf32>
    %cst_21 = arith.constant dense<0.000000e+00> : vector<8x8xf32>
    %52 = vector.multi_reduction <add>, %51, %cst_21 [2] : vector<8x8x16xf32> to vector<8x8xf32>
    %cst_22 = arith.constant dense<0xFF800000> : vector<8xf32>
    %53 = vector.multi_reduction <maximumf>, %52, %cst_22 [1] : vector<8x8xf32> to vector<8xf32>
    %54 = vector.shape_cast %53 : vector<8xf32> to vector<8x1xf32>
    %55 = vector.broadcast %54 : vector<8x1xf32> to vector<8x8xf32>
    %56 = arith.subf %52, %55 : vector<8x8xf32>
    %57 = math.exp %56 : vector<8x8xf32>
    %cst_23 = arith.constant dense<0.000000e+00> : vector<8xf32>
    %58 = vector.multi_reduction <add>, %57, %cst_23 [1] : vector<8x8xf32> to vector<8xf32>
    %59 = vector.shape_cast %58 : vector<8xf32> to vector<8x1xf32>
    %60 = vector.broadcast %59 : vector<8x1xf32> to vector<8x8xf32>
    %61 = arith.divf %57, %60 : vector<8x8xf32>
    %62 = vector.shape_cast %61 : vector<8x8xf32> to vector<8x8x1xf32>
    %63 = vector.broadcast %62 : vector<8x8x1xf32> to vector<8x8x8xf32>
    %64 = arith.mulf %63, %41 : vector<8x8x8xf32>
    %cst_24 = arith.constant dense<0.000000e+00> : vector<8x8xf32>
    %65 = vector.multi_reduction <add>, %64, %cst_24 [1] : vector<8x8x8xf32> to vector<8x8xf32>
    %c0_25 = arith.constant 0 : index
    %c0_26 = arith.constant 0 : index
    %66 = vector.load %arg7[%c0_25, %c0_26] : memref<25x32xf32, #tpu.memory_space<vmem>>, vector<16x32xf32>
    %cst_27 = arith.constant dense<0.000000e+00> : vector<8x32xf32>
    %67 = tpu.matmul %36, %66, %cst_27 {dimension_numbers = #tpu.dot_dimension_numbers<[1], [0], [0], [1], [0, 0, 1, 1], [], []>} : vector<8x16xf32>, vector<16x32xf32>, vector<8x32xf32> -> vector<8x32xf32>
    %c16_28 = arith.constant 16 : index
    %c0_29 = arith.constant 0 : index
    %68 = vector.load %arg7[%c16_28, %c0_29] : memref<25x32xf32, #tpu.memory_space<vmem>>, vector<8x32xf32>
    %cst_30 = arith.constant dense<0.000000e+00> : vector<8x32xf32>
    %69 = tpu.matmul %65, %68, %cst_30 {dimension_numbers = #tpu.dot_dimension_numbers<[1], [0], [0], [1], [0, 0, 1, 1], [], []>} : vector<8x8xf32>, vector<8x32xf32>, vector<8x32xf32> -> vector<8x32xf32>
    %70 = arith.addf %67, %69 : vector<8x32xf32>
    %c24 = arith.constant 24 : index
    %c0_31 = arith.constant 0 : index
    %71 = vector.load %arg7[%c24, %c0_31] : memref<25x32xf32, #tpu.memory_space<vmem>>, vector<1x32xf32>
    %72 = vector.broadcast %71 : vector<1x32xf32> to vector<8x32xf32>
    %73 = arith.addf %70, %72 : vector<8x32xf32>
    %cst_32 = arith.constant 0.000000e+00 : f32
    %74 = vector.broadcast %cst_32 : f32 to vector<8x128xf32>
    %c0_33 = arith.constant 0 : index
    %c0_34 = arith.constant 0 : index
    %75 = vector.load %arg8[%c0_33, %c0_34] : memref<8x128xf32, #tpu.memory_space<vmem>>, vector<8x128xf32>
    tpu.vector_store %arg8[%c0_33, %c0_34], %74 {strides = array<i32>} : memref<8x128xf32, #tpu.memory_space<vmem>>, vector<8x128xf32>,
    %c0_35 = arith.constant 0 : index
    %c0_36 = arith.constant 0 : index
    %76 = vector.load %arg8[%c0_35, %c0_36] : memref<8x128xf32, #tpu.memory_space<vmem>>, vector<8x32xf32>
    tpu.vector_store %arg8[%c0_35, %c0_36], %73 {strides = array<i32>} : memref<8x128xf32, #tpu.memory_space<vmem>>, vector<8x32xf32>,
    %c0_37 = arith.constant 0 : index
    %c32_38 = arith.constant 32 : index
    %77 = vector.load %arg8[%c0_37, %c32_38] : memref<8x128xf32, #tpu.memory_space<vmem>>, vector<8x16xf32>
    tpu.vector_store %arg8[%c0_37, %c32_38], %32 {strides = array<i32>} : memref<8x128xf32, #tpu.memory_space<vmem>>, vector<8x16xf32>,
    %c0_39 = arith.constant 0 : index
    %c48 = arith.constant 48 : index
    %78 = vector.load %arg8[%c0_39, %c48] : memref<8x128xf32, #tpu.memory_space<vmem>>, vector<8x8xf32>
    tpu.vector_store %arg8[%c0_39, %c48], %61 {strides = array<i32>} : memref<8x128xf32, #tpu.memory_space<vmem>>, vector<8x8xf32>,
    return
  }
  func.func @transform_0(%arg0: i32) -> (i32, i32, i32) {
    %c0_i32 = arith.constant 0 : i32
    %c0_i32_0 = arith.constant 0 : i32
    %c0_i32_1 = arith.constant 0 : i32
    return %arg0, %c0_i32, %c0_i32_0 : i32, i32, i32
  }
  func.func @transform_1(%arg0: i32) -> (i32, i32, i32) {
    %c0_i32 = arith.constant 0 : i32
    %c0_i32_0 = arith.constant 0 : i32
    %c0_i32_1 = arith.constant 0 : i32
    return %arg0, %c0_i32, %c0_i32_0 : i32, i32, i32
  }
  func.func @transform_2(%arg0: i32) -> (i32, i32) {
    %c0_i32 = arith.constant 0 : i32
    %c0_i32_0 = arith.constant 0 : i32
    return %arg0, %c0_i32 : i32, i32
  }
  func.func @transform_3(%arg0: i32) -> (i32, i32) {
    %c0_i32 = arith.constant 0 : i32
    %c0_i32_0 = arith.constant 0 : i32
    %c0_i32_1 = arith.constant 0 : i32
    return %c0_i32, %c0_i32_0 : i32, i32
  }
  func.func @transform_4(%arg0: i32) -> (i32, i32) {
    %c0_i32 = arith.constant 0 : i32
    %c0_i32_0 = arith.constant 0 : i32
    %c0_i32_1 = arith.constant 0 : i32
    return %c0_i32, %c0_i32_0 : i32, i32
  }
  func.func @transform_5(%arg0: i32) -> (i32, i32) {
    %c0_i32 = arith.constant 0 : i32
    %c0_i32_0 = arith.constant 0 : i32
    %c0_i32_1 = arith.constant 0 : i32
    return %c0_i32, %c0_i32_0 : i32, i32
  }
  func.func @transform_6(%arg0: i32) -> (i32, i32) {
    %c0_i32 = arith.constant 0 : i32
    %c0_i32_0 = arith.constant 0 : i32
    %c0_i32_1 = arith.constant 0 : i32
    return %c0_i32, %c0_i32_0 : i32, i32
  }
  func.func @transform_7(%arg0: i32) -> (i32, i32) {
    %c0_i32 = arith.constant 0 : i32
    %c0_i32_0 = arith.constant 0 : i32
    return %arg0, %c0_i32 : i32, i32
  }
}

</mosaic_0001>

<bundles_post_ra>
// kernel: co_attention.1
= control target key start
LH: loop header
LB: loop body
LE: loop exit
PB: predicated region body
PF: predicated region fallthrough
CT: control target
= control target key end

     0   :  { %v3327_v0 = vmov 0.0|0.0   ;;  %vm2341_vm0 = vmmov 0   ;;  %v2342_v4 = vmov 0.0   ;;  %vm146_vm1 = vcmask 130048   ;;  %s3295_s3 = inlined_call_operand.vmem [shape: f32[33,32], index: 3, kind: input, shape index: {}]   ;;  %s3296_s4 = inlined_call_operand.vmem [shape: f32[24,16], index: 4, kind: input, shape index: {}]   ;;  %s3297_s0 = inlined_call_operand.vmem [shape: bf16[8,16,16], index: 0, kind: input, shape index: {}]   ;;  %s3298_s7 = inlined_call_operand.vmem [shape: f32[8,128], index: 7, kind: output, shape index: {}]   ;;  %s3299_s2 = inlined_call_operand.vmem [shape: bf16[8,32], index: 2, kind: input, shape index: {}]   ;;  %s3300_s1 = inlined_call_operand.vmem [shape: bf16[8,8,8], index: 1, kind: input, shape index: {}]   ;;  %s3301_s5 = inlined_call_operand.vmem [shape: f32[2,16], index: 5, kind: input, shape index: {}]   ;;  %s3302_s6 = inlined_call_operand.vmem [shape: f32[25,32], index: 6, kind: input, shape index: {}]  }
   0x1   :  { %2190 = vmatprep.subr.bf16.mxu0 %v3327_v0  ;;  %v28_v1 = vld [vmem:[%s3295_s3] sm:$0xff]  ;;  %v29_v2 = vld [vmem:[%s3295_s3 + $0x8] sm:$0xff]  ;;  %2133 = vmatprep.mubr.msk.f32.mxu0 %vm2341_vm0, %v2342_v4  ;;  %1867 = vst [vmem:[%s3298_s7] sm:$0xff] %v2342_v4  ;;  %v30_v8 = vld [vmem:[%s3295_s3 + $0x10] sm:$0xff]  ;;  %vm37_vm2 = vcmask 261120   ;;  %vm1126_vm3 = vcmask 64512   ;;  %v345_v52 = vlaneseq  ;;  %vm557_vm4 = vcmask 130112  }
   0x2   :  { %v112_v3 = vld [vmem:[%s3296_s4] sm:$0xff]  ;;  %v2191_v5 = vpack.c.bf16 %v29_v2, %v28_v1  ;;  %v113_v6 = vld [vmem:[%s3296_s4 + $0x8] sm:$0xff]  ;;  %v31_v11 = vld [vmem:[%s3295_s3 + $0x18] sm:$0xff]  ;;  %v2343_v50 = vmov 1966171168   ;;  %vm622_vm5 = vcmask 1041409  }
   0x3   :  { %v2408_v7 = vld [vmem:[%s3297_s0] sm:$0xff]   ;;  %v2196_v9 = vpack.c.bf16 %v113_v6, %v112_v3  ;;  %v2420_v12 = vld [vmem:[%s3297_s0 + $0x8] sm:$0xff]   ;;  %v2194_v13 = vpack.c.bf16 %v31_v11, %v30_v8  ;;  %v1109_v17 = vld [vmem:[%s3296_s4 + $0x10] sm:$0xff]  ;;  %v343_v51 = vunpack.c.l.s4 %v2343_v50  ;;  %v2579_v54 = vshrl.u32 %v345_v52, 7 }
   0x4   :  { %3356 = vst [vmem:[#allocation2_spill] sm:$0xff] %v2408_v7  ;;  %v3325_v10 = vunpack.c.l.bf16 %v2408_v7  ;;  %3357 = vst [vmem:[#allocation3_spill] sm:$0xff] %v2420_v12  ;;  %2192 = vmatpush3.bf16.msra.mxu0 %v2191_v5  ;;  %v26_v14 = vld [vmem:[%s3299_s2] sm:$0xf]  ;;  %v3326_v15 = vunpack.c.h.bf16 %v2408_v7  ;;  %v3323_v16 = vunpack.c.l.bf16 %v2420_v12  ;;  %v2442_v20 = vld [vmem:[%s3297_s0 + $0x10] sm:$0xff]   ;;  %v3324_v22 = vunpack.c.h.bf16 %v2420_v12 }
   0x5   :  { %2197 = vmatprep.subr.bf16.mxu1 %v2196_v9  ;;  %2193 = vmatprep.subr.bf16.mxu0 %v3327_v0  ;;  %v2437_v18 = vld [vmem:[%s3300_s1] sm:$0xff]   ;;  %v27_v19 = vunpack.c.l.bf16 %v26_v14  ;;  %3359 = vst [vmem:[#allocation5_spill] sm:$0xff] %v2442_v20  ;;  %v2452_v23 = vld [vmem:[%s3300_s1 + $0x8] sm:$0xff]   ;;  %v3322_v24 = vunpack.c.l.bf16 %v2442_v20  ;;  %v2462_v25 = vld [vmem:[%s3297_s0 + $0x18] sm:$0xff]   ;;  %v3321_v28 = vunpack.c.h.bf16 %v2442_v20  ;;  %v344_v53 = vunpack.c.0.s8 %v343_v51 }
   0x6   :  { %2199 = vmatpush3.bf16.msra.mxu1 %v2196_v9  ;;  %2140 = vmatprep.mubr.msk.f32.mxu1 %vm146_vm1, %v3325_v10  ;;  %3358 = vst [vmem:[#allocation4_spill] sm:$0xff] %v2437_v18  ;;  %v3312_v21 = vunpack.c.l.bf16 %v2437_v18  ;;  %3360 = vst [vmem:[#allocation6_spill] sm:$0xff] %v2452_v23  ;;  %v3311_v26 = vunpack.c.h.bf16 %v2437_v18  ;;  %v3310_v27 = vunpack.c.l.bf16 %v2452_v23  ;;  %v2476_v29 = vld [vmem:[%s3300_s1 + $0x10] sm:$0xff]   ;;  %v3319_v30 = vunpack.c.l.bf16 %v2462_v25  ;;  %v2486_v31 = vld [vmem:[%s3297_s0 + $0x20] sm:$0xff]  }
   0x7   :  { %3361 = vst [vmem:[#allocation7_spill] sm:$0xff] %v2462_v25  ;;  %3362 = vst [vmem:[#allocation8_spill] sm:$0xff] %v2476_v29  ;;  %v3309_v32 = vunpack.c.h.bf16 %v2452_v23  ;;  %v3308_v33 = vunpack.c.l.bf16 %v2476_v29  ;;  %v3320_v34 = vunpack.c.h.bf16 %v2462_v25  ;;  %v2503_v35 = vld [vmem:[%s3300_s1 + $0x18] sm:$0xff]   ;;  %v3318_v36 = vunpack.c.l.bf16 %v2486_v31  ;;  %v2512_v37 = vld [vmem:[%s3297_s0 + $0x28] sm:$0xff]  }
   0x8   :  { %2195 = vmatpush3.bf16.msra.mxu0 %v2194_v13  ;;  %3363 = vst [vmem:[#allocation9_spill] sm:$0xff] %v2486_v31  ;;  %3364 = vst [vmem:[#allocation10_spill] sm:$0xff] %v2503_v35  ;;  %v3307_v38 = vunpack.c.h.bf16 %v2476_v29  ;;  %v3306_v39 = vunpack.c.l.bf16 %v2503_v35  ;;  %v3317_v40 = vunpack.c.h.bf16 %v2486_v31  ;;  %v3315_v41 = vunpack.c.l.bf16 %v2512_v37  ;;  %v2533_v42 = vld [vmem:[%s3297_s0 + $0x30] sm:$0xff]   ;;  %v2553_v46 = vld [vmem:[%s3297_s0 + $0x38] sm:$0xff]  }
   0x9   :  { %2141 = vmatmul.mubr.msk.f32.vlgmr.msra.gmra.mrb[0].mxu1 %vm146_vm1, %v3326_v15  ;;  %2164 = vmatprep.subr.mxu0 %v1109_v17  ;;  %3365 = vst [vmem:[#allocation11_spill] sm:$0xff] %v2512_v37  ;;  %3366 = vst [vmem:[#allocation12_spill] sm:$0xff] %v2533_v42  ;;  %v3305_v43 = vunpack.c.h.bf16 %v2503_v35  ;;  %v3316_v44 = vunpack.c.h.bf16 %v2512_v37  ;;  %v3314_v45 = vunpack.c.l.bf16 %v2533_v42  ;;  %v3313_v47 = vunpack.c.h.bf16 %v2533_v42  ;;  %v2001_v55 = vld [vmem:[%s3295_s3 + $0x20] ss:$0 sm:$0xff]  ;;  %s2344_s3 = smov 112  }
   0xa   :  { %2143 = vmatprep.mubr.msk.f32.mxu1 %vm146_vm1, %v3323_v16  ;;  %3367 = vst [vmem:[#allocation13_spill] sm:$0xff] %v2553_v46  ;;  %v3304_v48 = vunpack.c.l.bf16 %v2553_v46  ;;  %v3303_v49 = vunpack.c.h.bf16 %v2553_v46  ;;  %3368 = vst [vmem:[#allocation14_spill] sm:$0xff] %v2579_v54  ;;  %v347_v57 = vsub.s32 %v344_v53, %v2579_v54  ;;  %v2586_v3 = vsub.s32 0, %v2579_v54 }
   0xb   :  { %2134 = vmatmul.mubr.msk.f32.vlgmr.msra.gmra.mrb[0].mxu0 %vm37_vm2, %v27_v19  ;;  %vm624_vm6 = vcmask 1042434   ;;  %vm626_vm7 = vcmask 1043459   ;;  %vm628_vm8 = vcmask 1044484   ;;  %vm630_vm9 = vcmask 1045509  }
   0xc   :  { %2165 = vmatpush3.msra.mxu0 %v1109_v17  ;;  %2166 = vmatprep.mubr.msk.f32.mxu0 %vm1126_vm3, %v3312_v21  ;;  %vm632_vm10 = vcmask 1046534   ;;  %vm634_vm11 = vcmask 1047559   ;;  %vm1879_vm12 = vcmask 392512   ;;  %vm1952_vm13 = vcmask 392448  }
   0xd   :  { %2144 = vmatmul.mubr.msk.f32.gmra.mrb[2].mxu1 %vm146_vm1, %v3324_v22  ;;  %2178 = vmatprep.subr.mxu0 %v2342_v4  ;;  %vm1995_vm14 = vcmask 458112  }
   0xe   :  { %2146 = vmatprep.mubr.msk.f32.mxu1 %vm146_vm1, %v3322_v24 }
   0xf   :  { %2167 = vmatmul.mubr.msk.f32.vlgmr.msra.gmra.mrb[2].mxu0 %vm1126_vm3, %v3311_v26 }
  0x10   :  { %2169 = vmatprep.mubr.msk.f32.mxu0 %vm1126_vm3, %v3310_v27 }
  0x11   :  { %2147 = vmatmul.mubr.msk.f32.gmra.mrb[4].mxu1 %vm146_vm1, %v3321_v28 }
  0x12   :  { %2149 = vmatprep.mubr.msk.f32.mxu1 %vm146_vm1, %v3319_v30 }
  0x13   :  { %2170 = vmatmul.mubr.msk.f32.gmra.mrb[4].mxu0 %vm1126_vm3, %v3309_v32 }
  0x14   :  { %2172 = vmatprep.mubr.msk.f32.mxu0 %vm1126_vm3, %v3308_v33 }
  0x15   :  { %2150 = vmatmul.mubr.msk.f32.gmra.mrb[6].mxu1 %vm146_vm1, %v3320_v34 }
  0x16   :  { %2152 = vmatprep.mubr.msk.f32.mxu1 %vm146_vm1, %v3318_v36 }
  0x17   :  { %2173 = vmatmul.mubr.msk.f32.gmra.mrb[6].mxu0 %vm1126_vm3, %v3307_v38 }
  0x18   :  { %2175 = vmatprep.mubr.msk.f32.mxu0 %vm1126_vm3, %v3306_v39 }
  0x19   :  { %2153 = vmatmul.mubr.msk.f32.gmra.mrb[8].mxu1 %vm146_vm1, %v3317_v40 }
  0x1a   :  { %2155 = vmatprep.mubr.msk.f32.mxu1 %vm146_vm1, %v3315_v41 }
  0x1b   :  { %2176 = vmatmul.mubr.msk.f32.gmra.mrb[8].mxu0 %vm1126_vm3, %v3305_v43 }
  0x1c   :  { %2180 = vmatprep.mubr.msk.f32.mxu0 %vm2341_vm0, %v2342_v4 }
  0x1d   :  { %2156 = vmatmul.mubr.msk.f32.gmra.mrb[10].mxu1 %vm146_vm1, %v3316_v44 }
  0x1e   :  { %2158 = vmatprep.mubr.msk.f32.mxu1 %vm146_vm1, %v3314_v45 }
  0x21   :  { %2159 = vmatmul.mubr.msk.f32.gmra.mrb[12].mxu1 %vm146_vm1, %v3313_v47 }
  0x22   :  { %2161 = vmatprep.mubr.msk.f32.mxu1 %vm146_vm1, %v3304_v48 }
  0x25   :  { %2162 = vmatmul.mubr.msk.f32.gmra.mrb[14].mxu1 %vm146_vm1, %v3303_v49 }
  0xdc   :  { %v2142_v56 = vpop.f32.mrb[0].mxu1 }
  0xdd   :  { %v261_v58 = vpop.f32.mrb[1].mxu1 }
  0xde   :  { %v107_v59 = vpop.f32.mrb[0].mxu0 }
  0xdf   :  { %v108_v60 = vadd.f32 %v2001_v55, %v107_v59  ;;  %v2135_v61 = vpop.f32.mrb[1].mxu0 }
  0xe0   :  { %v2145_v62 = vpop.f32.mrb[2].mxu1 }
  0xe1   :  { %v341_v63 = vcombine.high %v108_v60, %v108_v60  ;;  %v348_v1 = vrot.slane %v108_v60, %v347_v57  ;;  %v271_v2 = vpop.f32.mrb[3].mxu1 }
  0xe2   :  { %v2588_v4 = vpop.f32.mrb[2].mxu0 }
  0xe3   :  { %v355_v5 = vrot.slane %v341_v63, %v347_v57  ;;  %v356_v6 = vcombine.high %v348_v1, %v348_v1  ;;  %v364_v8 = vrot.slane %v348_v1, %v347_v57  ;;  %v2590_v9 = vpop.f32.mrb[3].mxu0 }
  0xe4   :  { %v2148_v11 = vpop.f32.mrb[4].mxu1 }
  0xe5   :  { %v378_v13 = vrot.slane %v356_v6, %v347_v57  ;;  %v386_v14 = vcombine.high %v364_v8, %v364_v8  ;;  %v281_v17 = vpop.f32.mrb[5].mxu1  ;;  %v357_v19 = vcombine.high %v355_v5, %v355_v5  ;;  %v393_v50 = vrot.slane %v364_v8, %v2586_v3 }
  0xe6   :  { %v2593_v51 = vpop.f32.mrb[4].mxu0  ;;  %v371_v53 = vrot.slane %v355_v5, %v347_v57 }
  0xe7   :  { %v397_v55 = vrot.slane %v378_v13, %v2586_v3  ;;  %v401_v59 = vrot.slane %v386_v14, %v2586_v3  ;;  %v388_v60 = vcombine.high %v378_v13, %v378_v13  ;;  %v2597_v61 = vpop.f32.mrb[5].mxu0  ;;  %v431_v63 = vadd.f32 %v2142_v56, %v393_v50  ;;  %1256 = vrot.lane.b32.xlu0 %v393_v50, %s2344_s3 }
  0xe8   :  { %v430_v1 = vadd.f32 %v393_v50, %v261_v58  ;;  %v2151_v6 = vpop.f32.mrb[6].mxu1  ;;  %v409_v13 = vrot.slane %v371_v53, %v2586_v3  ;;  %v385_v14 = vrot.slane %v357_v19, %v347_v57  ;;  %v387_v50 = vcombine.high %v371_v53, %v371_v53 }
  0xe9   :  { %v433_v49 = vadd.f32 %v2145_v62, %v397_v55  ;;  %v432_v48 = vadd.f32 %v397_v55, %v271_v2  ;;  %v435_v43 = vadd.f32 %v2148_v11, %v401_v59  ;;  %v434_v8 = vadd.f32 %v401_v59, %v281_v17  ;;  %1260 = vrot.lane.b32.xlu1 %v401_v59, %s2344_s3  ;;  %v291_v5 = vpop.f32.mrb[7].mxu1 }
  0xea   :  { %v405_v39 = vrot.slane %v388_v60, %v2586_v3  ;;  %v2602_v38 = vpop.f32.mrb[6].mxu0  ;;  %v413_v60 = vrot.slane %v385_v14, %v2586_v3  ;;  %v389_v32 = vcombine.high %v385_v14, %v385_v14 }
  0xeb   :  { %v2605_v56 = vpop.f32.mrb[7].mxu0  ;;  %1258 = vrot.lane.b32.xlu0 %v397_v55, %s2344_s3 }
  0xec   :  { %v437_v58 = vadd.f32 %v2151_v6, %v405_v39  ;;  %v436_v33 = vadd.f32 %v405_v39, %v291_v5  ;;  %v2154_v62 = vpop.f32.mrb[8].mxu1  ;;  %v417_v5 = vrot.slane %v387_v50, %v2586_v3  ;;  %v2623_v50 = vld [vmem:[%s3301_s5] sm:$0x3] }
  0xed   :  { %v439_v2 = vadd.f32 %v2154_v62, %v409_v13  ;;  %v301_v11 = vpop.f32.mrb[9].mxu1  ;;  %1262 = vrot.lane.b32.xlu1 %v405_v39, %s2344_s3  ;;  %v421_v39 = vrot.slane %v389_v32, %v2586_v3  ;;  %v2627_v32 = vrot.slane %v2623_v50, %v2586_v3 }
  0xee   :  { %v438_v17 = vadd.f32 %v409_v13, %v301_v11  ;;  %v2609_v59 = vpop.f32.mrb[8].mxu0 }
  0xef   :  { %v2612_v27 = vpop.f32.mrb[9].mxu0  ;;  %1264 = vrot.lane.b32.xlu0 %v409_v13, %s2344_s3 }
  0xf0   :  { %v2157_v57 = vpop.f32.mrb[10].mxu1 }
  0xf1   :  { %v441_v19 = vadd.f32 %v2157_v57, %v413_v60  ;;  %v311_v6 = vpop.f32.mrb[11].mxu1  ;;  %1266 = vrot.lane.b32.xlu1 %v413_v60, %s2344_s3 }
  0xf2   :  { %v440_v55 = vadd.f32 %v413_v60, %v311_v6 }
  0xf3   :  { %1268 = vrot.lane.b32.xlu0 %v417_v5, %s2344_s3 }
  0xf4   :  { %v2160_v53 = vpop.f32.mrb[12].mxu1 }
  0xf5   :  { %v443_v62 = vadd.f32 %v2160_v53, %v417_v5  ;;  %v321_v11 = vpop.f32.mrb[13].mxu1  ;;  %1270 = vrot.lane.b32.xlu1 %v421_v39, %s2344_s3 }
  0xf6   :  { %v442_v14 = vadd.f32 %v417_v5, %v321_v11 }
  0xf8   :  { %v2163_v26 = vpop.f32.mrb[14].mxu1 }
  0xf9   :  { %v445_v13 = vadd.f32 %v2163_v26, %v421_v39  ;;  %v331_v21 = vpop.f32.mrb[15].mxu1 }
  0xfa   :  { %v444_v57 = vadd.f32 %v421_v39, %v331_v21 }
  0xfb   :  { %2211 = vtanh.f32 %v445_v13 }
  0xfc   :  { %2213 = vtanh.f32 %v430_v1 }
  0xfd   :  { %2215 = vtanh.f32 %v432_v48 }
  0xfe   :  { %2217 = vtanh.f32 %v431_v63 }
  0xff   :  { %2219 = vtanh.f32 %v433_v49 }
 0x100   :  { %2221 = vtanh.f32 %v434_v8 }
 0x101   :  { %2223 = vtanh.f32 %v435_v43 }
 0x102   :  { %2225 = vtanh.f32 %v437_v58 }
 0x103   :  { %2227 = vtanh.f32 %v436_v33 }
 0x104   :  { %2229 = vtanh.f32 %v438_v17 }
 0x105   :  { %v2212_v60 = vpop.eup %2211  ;;  %2231 = vtanh.f32 %v439_v2 }
 0x106   :  { %v2630_v6 = vmul.f32 %v2212_v60, %v2627_v32  ;;  %v2214_v26 = vpop.eup %2213  ;;  %2233 = vtanh.f32 %v441_v19 }
 0x107   :  { %v466_v21 = vmul.f32 %v2214_v26, %v2627_v32  ;;  %v2216_v1 = vpop.eup %2215  ;;  %2235 = vtanh.f32 %v440_v55 }
 0x108   :  { %v2218_v5 = vpop.eup %2217  ;;  %v468_v53 = vmul.f32 %v2216_v1, %v2627_v32  ;;  %2237 = vtanh.f32 %v442_v14 }
 0x109   :  { %v482_v39 = vsel %vm146_vm1, %v466_v21, 0.0  ;;  %v2220_v11 = vpop.eup %2219  ;;  %v467_v48 = vmul.f32 %v2218_v5, %v2627_v32  ;;  %2239 = vtanh.f32 %v443_v62 }
 0x10a   :  { %v2222_v63 = vpop.eup %2221  ;;  %v488_v49 = vsel %vm146_vm1, %v468_v53, 0.0  ;;  %v469_v43 = vmul.f32 %v2220_v11, %v2627_v32  ;;  %2241 = vtanh.f32 %v444_v57 }
 0x10b   :  { %v2224_v8 = vpop.eup %2223  ;;  %v485_v33 = vsel %vm146_vm1, %v467_v48, 0.0  ;;  %v470_v58 = vmul.f32 %v2222_v63, %v2627_v32 }
 0x10c   :  { %v2226_v13 = vpop.eup %2225  ;;  %v491_v17 = vsel %vm146_vm1, %v469_v43, 0.0  ;;  %v471_v60 = vmul.f32 %v2224_v8, %v2627_v32 }
 0x10d   :  { %v2228_v26 = vpop.eup %2227  ;;  %v494_v2 = vsel %vm146_vm1, %v470_v58, 0.0  ;;  %v473_v21 = vmul.f32 %v2226_v13, %v2627_v32 }
 0x10e   :  { %v2230_v19 = vpop.eup %2229  ;;  %v497_v1 = vsel %vm146_vm1, %v471_v60, 0.0  ;;  %v472_v5 = vmul.f32 %v2228_v26, %v2627_v32 }
 0x10f   :  { %v2232_v55 = vpop.eup %2231  ;;  %v474_v53 = vmul.f32 %v2230_v19, %v2627_v32 }
 0x110   :  { %v2234_v11 = vpop.eup %2233  ;;  %v500_v14 = vsel %vm146_vm1, %v472_v5, 0.0  ;;  %v475_v48 = vmul.f32 %v2232_v55, %v2627_v32 }
 0x111   :  { %v2236_v63 = vpop.eup %2235  ;;  %v506_v62 = vsel %vm146_vm1, %v474_v53, 0.0 }
 0x112   :  { %483 = vadd.xlane.f32.xlu0 %v482_v39  ;;  %v503_v39 = vsel %vm146_vm1, %v473_v21, 0.0  ;;  %v2238_v43 = vpop.eup %2237  ;;  %v509_v8 = vsel %vm146_vm1, %v475_v48, 0.0 }
 0x113   :  { %v2240_v58 = vpop.eup %2239  ;;  %v478_v13 = vmul.f32 %v2238_v43, %v2627_v32 }
 0x114   :  { %v479_v60 = vmul.f32 %v2240_v58, %v2627_v32  ;;  %v2242_v26 = vpop.eup %2241 }
 0x115   :  { %v480_v19 = vmul.f32 %v2242_v26, %v2627_v32 }
 0x116   :  { %489 = vadd.xlane.f32.xlu0 %v488_v49  ;;  %v477_v49 = vmul.f32 %v2234_v11, %v2627_v32  ;;  %v521_v21 = vsel %vm146_vm1, %v479_v60, 0.0 }
 0x118   :  { %v515_v57 = vsel %vm146_vm1, %v477_v49, 0.0 }
 0x119   :  { %486 = vadd.xlane.f32.xlu1 %v485_v33  ;;  %v476_v33 = vmul.f32 %v2236_v63, %v2627_v32  ;;  %v2667_v32 = vsub.s32 1, %v2579_v54 }
 0x11a   :  { %492 = vadd.xlane.f32.xlu0 %v491_v17 }
 0x11b   :  { %v512_v17 = vsel %vm146_vm1, %v476_v33, 0.0 }
 0x11d   :  { %495 = vadd.xlane.f32.xlu1 %v494_v2  ;;  %v518_v2 = vsel %vm146_vm1, %v478_v13, 0.0 }
 0x11e   :  { %498 = vadd.xlane.f32.xlu0 %v497_v1  ;;  %v524_v1 = vsel %vm146_vm1, %v480_v19, 0.0 }
 0x121   :  { %504 = vadd.xlane.f32.xlu1 %v503_v39 }
 0x122   :  { %501 = vadd.xlane.f32.xlu0 %v500_v14 }
 0x125   :  { %507 = vadd.xlane.f32.xlu1 %v506_v62 }
 0x126   :  { %510 = vadd.xlane.f32.xlu0 %v509_v8 }
 0x129   :  { %516 = vadd.xlane.f32.xlu1 %v515_v57 }
 0x12a   :  { %513 = vadd.xlane.f32.xlu0 %v512_v17 }
 0x12d   :  { %519 = vadd.xlane.f32.xlu1 %v518_v2 }
 0x12e   :  { %522 = vadd.xlane.f32.xlu0 %v521_v21 }
 0x132   :  { %525 = vadd.xlane.f32.xlu0 %v524_v1 }
 0x159   :  { %v1257_v5 = vpop.permute.xlu0 %1256 }
 0x15a   :  { %v1280_v55 = vadd.f32 %v1257_v5, %v2590_v9 }
 0x15b   :  { %v1261_v39 = vpop.permute.xlu1 %1260 }
 0x15c   :  { %v1282_v53 = vadd.f32 %v1261_v39, %v2597_v61  ;;  %2243 = vtanh.f32 %v1280_v55  ;;  %v1299_v61 = vrot.slane %v2623_v50, %v2667_v32 }
 0x15d   :  { %v1259_v11 = vpop.permute.xlu0 %1258 }
 0x15e   :  { %2245 = vtanh.f32 %v1282_v53  ;;  %v1281_v14 = vadd.f32 %v2588_v4, %v1259_v11 }
 0x15f   :  { %v1263_v48 = vpop.permute.xlu1 %1262 }
 0x160   :  { %v1283_v63 = vadd.f32 %v2593_v51, %v1263_v48  ;;  %2247 = vtanh.f32 %v1281_v14 }
 0x161   :  { %v1265_v62 = vpop.permute.xlu0 %1264 }
 0x162   :  { %2249 = vtanh.f32 %v1283_v63  ;;  %v1284_v49 = vadd.f32 %v1265_v62, %v2605_v56  ;;  %v527_v62 = vsel %vm146_vm1, %v2630_v6, 0.0 }
 0x163   :  { %v1267_v9 = vpop.permute.xlu1 %1266 }
 0x164   :  { %v1285_v43 = vadd.f32 %v2602_v38, %v1267_v9  ;;  %2251 = vtanh.f32 %v1284_v49 }
 0x165   :  { %v1269_v4 = vpop.permute.xlu0 %1268 }
 0x166   :  { %2253 = vtanh.f32 %v1285_v43  ;;  %v2244_v8 = vpop.eup %2243  ;;  %v1286_v51 = vadd.f32 %v1269_v4, %v2612_v27 }
 0x167   :  { %v1271_v33 = vpop.permute.xlu1 %1270  ;;  %v1300_v13 = vmul.f32 %v2244_v8, %v1299_v61 }
 0x168   :  { %v2246_v58 = vpop.eup %2245  ;;  %v1287_v57 = vadd.f32 %v2609_v59, %v1271_v33  ;;  %2255 = vtanh.f32 %v1286_v51 }
 0x169   :  { %v1308_v56 = vsel %vm146_vm1, %v1300_v13, 0.0  ;;  %v1302_v17 = vmul.f32 %v2246_v58, %v1299_v61 }
 0x16a   :  { %2257 = vtanh.f32 %v1287_v57  ;;  %v2248_v38 = vpop.eup %2247  ;;  %1309 = vadd.xlane.f32.xlu1 %v1308_v56 }
 0x16b   :  { %v1301_v50 = vmul.f32 %v2248_v38, %v1299_v61  ;;  %v1314_v26 = vsel %vm146_vm1, %v1302_v17, 0.0  ;;  %v2712_v38 = vand.u32 127, %v345_v52 }
 0x16c   :  { %v2250_v60 = vpop.eup %2249 }
 0x16d   :  { %v1311_v2 = vsel %vm146_vm1, %v1301_v50, 0.0  ;;  %v1303_v21 = vmul.f32 %v2250_v60, %v1299_v61  ;;  %3369 = vst [vmem:[#allocation15_spill] sm:$0xff] %v2712_v38  ;;  %v552_v50 = vadd.s32 4294967288, %v2712_v38 }
 0x16e   :  { %v2252_v27 = vpop.eup %2251  ;;  %1315 = vadd.xlane.f32.xlu1 %v1314_v26  ;;  %1312 = vadd.xlane.f32.xlu0 %v1311_v2 }
 0x16f   :  { %v1304_v59 = vmul.f32 %v2252_v27, %v1299_v61  ;;  %v1317_v5 = vsel %vm146_vm1, %v1303_v21, 0.0  ;;  %v2722_v21 = vsub.s32 %v552_v50, %v2579_v54  ;;  %v2726_v27 = vsub.s32 %v2712_v38, %v2579_v54 }
 0x170   :  { %v2254_v19 = vpop.eup %2253 }
 0x171   :  { %v1320_v1 = vsel %vm146_vm1, %v1304_v59, 0.0  ;;  %v1305_v55 = vmul.f32 %v2254_v19, %v1299_v61 }
 0x172   :  { %v2256_v39 = vpop.eup %2255  ;;  %1321 = vadd.xlane.f32.xlu1 %v1320_v1  ;;  %1318 = vadd.xlane.f32.xlu0 %v1317_v5 }
 0x173   :  { %v1306_v11 = vmul.f32 %v2256_v39, %v1299_v61  ;;  %v1323_v48 = vsel %vm146_vm1, %v1305_v55, 0.0 }
 0x174   :  { %v2258_v53 = vpop.eup %2257 }
 0x175   :  { %v1326_v14 = vsel %vm146_vm1, %v1306_v11, 0.0  ;;  %v1307_v63 = vmul.f32 %v2258_v53, %v1299_v61 }
 0x176   :  { %1327 = vadd.xlane.f32.xlu1 %v1326_v14  ;;  %1324 = vadd.xlane.f32.xlu0 %v1323_v48 }
 0x177   :  { %v1329_v49 = vsel %vm146_vm1, %v1307_v63, 0.0 }
 0x17a   :  { %528 = vadd.xlane.f32.xlu1 %v527_v62  ;;  %1330 = vadd.xlane.f32.xlu0 %v1329_v49 }
 0x19f   :  { %v2685_v9 = vpop.xlane.xlu0 %483 }
 0x1a0   :  { %v551_v39 = vrot.slane %v2685_v9, %v2726_v27 }
 0x1a3   :  { %v2687_v43 = vpop.xlane.xlu0 %489 }
 0x1a4   :  { %v562_v14 = vrot.slane %v2687_v43, %v2726_v27 }
 0x1a6   :  { %v2691_v8 = vpop.xlane.xlu1 %486 }
 0x1a7   :  { %v2689_v4 = vpop.xlane.xlu0 %492  ;;  %v556_v52 = vrot.slane %v2691_v8, %v2722_v21 }
 0x1a8   :  { %v566_v53 = vrot.slane %v2689_v4, %v2722_v21 }
 0x1a9   :  { %v558_v50 = vsel %vm557_vm4, %v556_v52, %v551_v39 }
 0x1aa   :  { %v2695_v61 = vpop.xlane.xlu1 %495  ;;  %v567_v39 = vsel %vm557_vm4, %v566_v53, %v562_v14 }
 0x1ab   :  { %v2693_v51 = vpop.xlane.xlu0 %498  ;;  %v571_v48 = vrot.slane %v2695_v61, %v2726_v27  ;;  %v623_v14 = vsel %vm622_vm5, %v567_v39, %v558_v50 }
 0x1ac   :  { %v575_v63 = vrot.slane %v2693_v51, %v2722_v21 }
 0x1ae   :  { %v2699_v58 = vpop.xlane.xlu1 %504  ;;  %v576_v34 = vsel %vm557_vm4, %v575_v63, %v571_v48 }
 0x1af   :  { %v2697_v33 = vpop.xlane.xlu0 %501  ;;  %v584_v47 = vrot.slane %v2699_v58, %v2722_v21 }
 0x1b2   :  { %v2703_v57 = vpop.xlane.xlu1 %507 }
 0x1b3   :  { %v2701_v6 = vpop.xlane.xlu0 %510  ;;  %v589_v45 = vrot.slane %v2703_v57, %v2726_v27 }
 0x1b4   :  { %v593_v41 = vrot.slane %v2701_v6, %v2722_v21 }
 0x1b6   :  { %v2707_v56 = vpop.xlane.xlu1 %516  ;;  %v594_v48 = vsel %vm557_vm4, %v593_v41, %v589_v45 }
 0x1b7   :  { %v2705_v13 = vpop.xlane.xlu0 %513  ;;  %v602_v40 = vrot.slane %v2707_v56, %v2722_v21 }
 0x1b8   :  { %v598_v36 = vrot.slane %v2705_v13, %v2726_v27 }
 0x1ba   :  { %v2714_v60 = vpop.xlane.xlu1 %519  ;;  %v603_v22 = vsel %vm557_vm4, %v602_v40, %v598_v36 }
 0x1bb   :  { %v2709_v17 = vpop.xlane.xlu0 %522  ;;  %v607_v28 = vrot.slane %v2714_v60, %v2726_v27 }
 0x1bc   :  { %v611_v24 = vrot.slane %v2709_v17, %v2722_v21 }
 0x1be   :  { %v612_v41 = vsel %vm557_vm4, %v611_v24, %v607_v28 }
 0x1bf   :  { %v2717_v26 = vpop.xlane.xlu0 %525 }
 0x1c0   :  { %v616_v45 = vrot.slane %v2717_v26, %v2726_v27 }
 0x1f7   :  { %v2719_v2 = vpop.xlane.xlu1 %1309 }
 0x1f8   :  { %v1343_v1 = vrot.slane %v2719_v2, %v2726_v27 }
 0x1fb   :  { %v2728_v19 = vpop.xlane.xlu1 %1315  ;;  %v2730_v59 = vpop.xlane.xlu0 %1312 }
 0x1fc   :  { %v1347_v5 = vrot.slane %v2730_v59, %v2726_v27  ;;  %v1351_v55 = vrot.slane %v2728_v19, %v2726_v27 }
 0x1fe   :  { %v1372_v11 = vsel %vm622_vm5, %v1347_v5, %v1343_v1  ;;  %v580_v1 = vrot.slane %v2697_v33, %v2726_v27 }
 0x1ff   :  { %v2751_v62 = vpop.xlane.xlu1 %1321  ;;  %v2753_v49 = vpop.xlane.xlu0 %1318  ;;  %v1373_v52 = vsel %vm624_vm6, %v1351_v55, %v1372_v11 }
 0x200   :  { %v1355_v5 = vrot.slane %v2753_v49, %v2726_v27  ;;  %v1359_v44 = vrot.slane %v2751_v62, %v2726_v27  ;;  %v585_v53 = vsel %vm557_vm4, %v584_v47, %v580_v1 }
 0x202   :  { %v1374_v30 = vsel %vm626_vm7, %v1355_v5, %v1373_v52  ;;  %v625_v52 = vsel %vm624_vm6, %v576_v34, %v623_v14  ;;  %v2345_v14 = vmov 0  }
 0x203   :  { %v2780_v16 = vpop.xlane.xlu1 %1327  ;;  %v2782_v55 = vpop.xlane.xlu0 %1324  ;;  %v1375_v5 = vsel %vm628_vm8, %v1359_v44, %v1374_v30  ;;  %v627_v1 = vsel %vm626_vm7, %v585_v53, %v625_v52  ;;  %2210 = vset.pattern.permute.xlu0 %v2345_v14  ;;  %2209 = vset.pattern.permute.xlu1 %v2345_v14 }
 0x204   :  { %v1363_v11 = vrot.slane %v2782_v55, %v2726_v27  ;;  %v1367_v63 = vrot.slane %v2780_v16, %v2726_v27  ;;  %v629_v36 = vsel %vm628_vm8, %v594_v48, %v627_v1 }
 0x205   :  { %v631_v44 = vsel %vm630_vm9, %v603_v22, %v629_v36  ;;  %v2819_v22 = vsub.s32 3, %v2579_v54 }
 0x206   :  { %v1376_v47 = vsel %vm630_vm9, %v1363_v11, %v1375_v5  ;;  %v633_v24 = vsel %vm632_vm10, %v612_v41, %v631_v44  ;;  %v2824_v5 = vsub.s32 4, %v2579_v54 }
 0x207   :  { %v2796_v10 = vpop.xlane.xlu1 %528  ;;  %v2798_v15 = vpop.xlane.xlu0 %1330  ;;  %v1377_v40 = vsel %vm632_vm10, %v1367_v63, %v1376_v47 }
 0x208   :  { %v620_v30 = vrot.slane %v2796_v10, %v2722_v21  ;;  %v1371_v34 = vrot.slane %v2798_v15, %v2726_v27 }
 0x20a   :  { %v1378_v50 = vsel %vm634_vm11, %v1371_v34, %v1377_v40  ;;  %v621_v39 = vsel %vm557_vm4, %v620_v30, %v616_v45  ;;  %v2833_v45 = vsub.s32 5, %v2579_v54  ;;  %v2841_v40 = vsub.s32 2, %v2579_v54 }
 0x20b   :  { %v1380_v28 = vsel %vm1126_vm3, %v1378_v50, -inf  ;;  %v635_v53 = vsel %vm634_vm11, %v621_v39, %v633_v24  ;;  %v2845_v50 = vsub.s32 6, %v2579_v54 }
 0x20c   :  { %1381 = vmax.xlane.f32.xlu1 %v1380_v28  ;;  %v637_v11 = vsel %vm146_vm1, %v635_v53, -inf }
 0x20d   :  { %638 = vmax.xlane.f32.xlu0 %v637_v11 }
 0x29a   :  { %v2816_v48 = vpop.xlane.xlu0 %638 }
 0x29b   :  { %v644_v63 = vrot.slane %v2816_v48, %v2586_v3  ;;  %v656_v52 = vrot.slane %v2816_v48, %v2819_v22  ;;  %v648_v1 = vrot.slane %v2816_v48, %v2667_v32  ;;  %v2837_v30 = vrot.slane %v2816_v48, %v2824_v5 }
 0x29c   :  { %v2858_v53 = vrot.slane %v2816_v48, %v2845_v50 }
 0x29d   :  { %v681_v47 = vsub.f32 %v2685_v9, %v644_v63  ;;  %v682_v41 = vsub.f32 %v2691_v8, %v644_v63  ;;  %v687_v34 = vsub.f32 %v2697_v33, %v656_v52  ;;  %v683_v9 = vsub.f32 %v2687_v43, %v648_v1  ;;  %v2862_v63 = vpop.xlane.xlu1 %1381 }
 0x29e   :  { %v2849_v8 = vrot.slane %v2816_v48, %v2833_v45  ;;  %v690_v39 = vsub.f32 %v2701_v6, %v2837_v30  ;;  %v652_v33 = vrot.slane %v2816_v48, %v2841_v40  ;;  %v684_v28 = vsub.f32 %v2689_v4, %v648_v1 }
 0x29f   :  { %v697_v36 = vmul.f32 1.442695, %v681_v47  ;;  %v699_v44 = vmul.f32 1.442695, %v682_v41  ;;  %v709_v24 = vmul.f32 1.442695, %v687_v34  ;;  %v1391_v4 = vrot.slane %v2862_v63, %v2667_v32 }
 0x2a0   :  { %v701_v43 = vmul.f32 1.442695, %v683_v9  ;;  %v691_v11 = vsub.f32 %v2705_v13, %v2849_v8  ;;  %v715_v14 = vmul.f32 1.442695, %v690_v39  ;;  %v685_v6 = vsub.f32 %v2695_v61, %v652_v33 }
 0x2a1   :  { %2259 = vpow2.f32 %v697_v36  ;;  %v703_v47 = vmul.f32 1.442695, %v684_v28  ;;  %v694_v1 = vsub.f32 %v2709_v17, %v2858_v53  ;;  %v686_v13 = vsub.f32 %v2693_v51, %v652_v33 }
 0x2a2   :  { %2261 = vpow2.f32 %v699_v44  ;;  %v717_v34 = vmul.f32 1.442695, %v691_v11  ;;  %v705_v36 = vmul.f32 1.442695, %v685_v6  ;;  %v1403_v61 = vrot.slane %v2862_v63, %v2824_v5 }
 0x2a3   :  { %2263 = vpow2.f32 %v709_v24  ;;  %v1425_v44 = vsub.f32 %v2730_v59, %v1391_v4  ;;  %v723_v39 = vmul.f32 1.442695, %v694_v1  ;;  %v688_v24 = vsub.f32 %v2699_v58, %v656_v52 }
 0x2a4   :  { %2265 = vpow2.f32 %v701_v43  ;;  %v707_v28 = vmul.f32 1.442695, %v686_v13  ;;  %v2883_v51 = vsub.s32 7, %v2579_v54  ;;  %v1411_v59 = vrot.slane %v2862_v63, %v2845_v50 }
 0x2a5   :  { %2267 = vpow2.f32 %v715_v14  ;;  %v1428_v43 = vsub.f32 %v2751_v62, %v1403_v61  ;;  %v1434_v11 = vmul.f32 1.442695, %v1425_v44  ;;  %v689_v58 = vsub.f32 %v2703_v57, %v2837_v30 }
 0x2a6   :  { %2269 = vpow2.f32 %v703_v47  ;;  %v711_v52 = vmul.f32 1.442695, %v688_v24  ;;  %v1430_v47 = vsub.f32 %v2780_v16, %v1411_v59  ;;  %v2902_v62 = vrot.slane %v2816_v48, %v2883_v51 }
 0x2a7   :  { %2271 = vpow2.f32 %v717_v34  ;;  %v1440_v4 = vmul.f32 1.442695, %v1428_v43  ;;  %v692_v57 = vsub.f32 %v2707_v56, %v2849_v8  ;;  %v713_v30 = vmul.f32 1.442695, %v689_v58 }
 0x2a8   :  { %2273 = vpow2.f32 %v705_v36  ;;  %v1444_v16 = vmul.f32 1.442695, %v1430_v47  ;;  %v695_v13 = vsub.f32 %v2717_v26, %v2902_v62  ;;  %v1387_v36 = vrot.slane %v2862_v63, %v2586_v3 }
 0x2a9   :  { %2275 = vpow2.f32 %v723_v39  ;;  %v693_v56 = vsub.f32 %v2714_v60, %v2858_v53  ;;  %v719_v8 = vmul.f32 1.442695, %v692_v57  ;;  %v1395_v39 = vrot.slane %v2862_v63, %v2841_v40 }
 0x2aa   :  { %2277 = vpow2.f32 %v707_v28  ;;  %v725_v44 = vmul.f32 1.442695, %v695_v13  ;;  %v1424_v24 = vsub.f32 %v2719_v2, %v1387_v36  ;;  %v1399_v59 = vrot.slane %v2862_v63, %v2819_v22 }
 0x2ab   :  { %v2865_v41 = vpop.eup %2259  ;;  %2279 = vpow2.f32 %v1434_v11  ;;  %v721_v28 = vmul.f32 1.442695, %v693_v56  ;;  %v1426_v43 = vsub.f32 %v2728_v19, %v1395_v39 }
 0x2ac   :  { %746 = vperm.xlu1 %2209, %v2865_v41   ;;  %v2873_v9 = vpop.eup %2261  ;;  %2281 = vpow2.f32 %v711_v52  ;;  %v1432_v11 = vmul.f32 1.442695, %v1424_v24  ;;  %v1407_v52 = vrot.slane %v2862_v63, %v2833_v45  ;;  %v1427_v47 = vsub.f32 %v2753_v49, %v1399_v59 }
 0x2ad   :  { %v2879_v17 = vpop.eup %2263  ;;  %2283 = vpow2.f32 %v1440_v4  ;;  %v1436_v4 = vmul.f32 1.442695, %v1426_v43 }
 0x2ae   :  { %764 = vperm.xlu0 %2210, %v2879_v17   ;;  %v2886_v33 = vpop.eup %2265  ;;  %2285 = vpow2.f32 %v713_v30  ;;  %v1415_v30 = vrot.slane %v2862_v63, %v2883_v51  ;;  %v1438_v13 = vmul.f32 1.442695, %v1427_v47 }
 0x2af   :  { %v2892_v14 = vpop.eup %2267  ;;  %2287 = vpow2.f32 %v1444_v16  ;;  %v1429_v16 = vsub.f32 %v2782_v55, %v1407_v52  ;;  %v696_v55 = vsub.f32 %v2796_v10, %v2902_v62 }
 0x2b0   :  { %749 = vperm.xlu1 %2209, %v2873_v9   ;;  %v2897_v6 = vpop.eup %2269  ;;  %2289 = vpow2.f32 %v719_v8  ;;  %v1431_v36 = vsub.f32 %v2798_v15, %v1415_v30 }
 0x2b1   :  { %v2905_v1 = vpop.eup %2271  ;;  %2291 = vpow2.f32 %v725_v44  ;;  %v1442_v56 = vmul.f32 1.442695, %v1429_v16  ;;  %v727_v39 = vmul.f32 1.442695, %v696_v55 }
 0x2b2   :  { %773 = vperm.xlu0 %2210, %v2892_v14   ;;  %v2910_v34 = vpop.eup %2273  ;;  %2293 = vpow2.f32 %v721_v28  ;;  %v1446_v63 = vmul.f32 1.442695, %v1431_v36 }
 0x2b3   :  { %v2915_v48 = vpop.eup %2275  ;;  %2295 = vpow2.f32 %v1432_v11 }
 0x2b4   :  { %752 = vperm.xlu1 %2209, %v2886_v33   ;;  %v2922_v61 = vpop.eup %2277  ;;  %2297 = vpow2.f32 %v1436_v4 }
 0x2b5   :  { %v2925_v26 = vpop.eup %2279  ;;  %2299 = vpow2.f32 %v1438_v13 }
 0x2b6   :  { %776 = vperm.xlu0 %2210, %v2905_v1   ;;  %v2931_v60 = vpop.eup %2281  ;;  %2301 = vpow2.f32 %v1442_v56 }
 0x2b7   :  { %v2934_v53 = vpop.eup %2283  ;;  %2303 = vpow2.f32 %v1446_v63 }
 0x2b8   :  { %755 = vperm.xlu1 %2209, %v2897_v6   ;;  %v2940_v2 = vpop.eup %2285  ;;  %2305 = vpow2.f32 %v727_v39 }
 0x2b9   :  { %v2943_v58 = vpop.eup %2287 }
 0x2ba   :  { %785 = vperm.xlu0 %2210, %v2915_v48   ;;  %v2949_v19 = vpop.eup %2289 }
 0x2bb   :  { %v2952_v57 = vpop.eup %2291 }
 0x2bc   :  { %758 = vperm.xlu1 %2209, %v2910_v34   ;;  %v2958_v49 = vpop.eup %2293 }
 0x2bd   :  { %v2962_v8 = vpop.eup %2295 }
 0x2be   :  { %1460 = vperm.xlu0 %2210, %v2925_v26   ;;  %v2967_v44 = vpop.eup %2297 }
 0x2bf   :  { %v2970_v24 = vpop.eup %2299 }
 0x2c0   :  { %761 = vperm.xlu1 %2209, %v2922_v61   ;;  %v2973_v15 = vpop.eup %2301 }
 0x2c1   :  { %v2976_v28 = vpop.eup %2303 }
 0x2c2   :  { %1469 = vperm.xlu0 %2210, %v2934_v53   ;;  %v2979_v10 = vpop.eup %2305 }
 0x2c4   :  { %767 = vperm.xlu1 %2209, %v2931_v60  }
 0x2c6   :  { %1475 = vperm.xlu0 %2210, %v2943_v58  }
 0x2c8   :  { %770 = vperm.xlu1 %2209, %v2940_v2  }
 0x2ca   :  { %788 = vperm.xlu0 %2210, %v2952_v57  }
 0x2cc   :  { %779 = vperm.xlu1 %2209, %v2949_v19  }
 0x2d0   :  { %782 = vperm.xlu1 %2209, %v2958_v49  }
 0x2d4   :  { %1457 = vperm.xlu1 %2209, %v2962_v8  }
 0x2d8   :  { %1463 = vperm.xlu1 %2209, %v2967_v44  }
 0x2dc   :  { %1466 = vperm.xlu1 %2209, %v2970_v24  }
 0x2e0   :  { %1472 = vperm.xlu1 %2209, %v2973_v15  }
 0x2e4   :  { %1478 = vperm.xlu1 %2209, %v2976_v28  }
 0x2e8   :  { %791 = vperm.xlu1 %2209, %v2979_v10  }
 0x32b   :  { %v747_v62 = vpop.permute.xlu1 %746 }
 0x32d   :  { %v765_v52 = vpop.permute.xlu0 %764 }
 0x32f   :  { %v750_v59 = vpop.permute.xlu1 %749 }
 0x331   :  { %v774_v30 = vpop.permute.xlu0 %773 }
 0x333   :  { %v753_v43 = vpop.permute.xlu1 %752 }
 0x335   :  { %v777_v13 = vpop.permute.xlu0 %776 }
 0x337   :  { %v756_v11 = vpop.permute.xlu1 %755 }
 0x338   :  { %v809_v20 = vrot.slane %v756_v11, %v2722_v21  ;;  %v836_v11 = vrot.slane %v774_v30, %v2722_v21 }
 0x339   :  { %v786_v63 = vpop.permute.xlu0 %785 }
 0x33b   :  { %v759_v47 = vpop.permute.xlu1 %758 }
 0x33d   :  { %v1461_v39 = vpop.permute.xlu0 %1460 }
 0x33e   :  { %v1487_v18 = vrot.slane %v1461_v39, %v2726_v27  ;;  %v805_v39 = vrot.slane %v753_v43, %v2726_v27 }
 0x33f   :  { %v762_v4 = vpop.permute.xlu1 %761 }
 0x341   :  { %v1470_v29 = vpop.permute.xlu0 %1469 }
 0x342   :  { %v1499_v7 = vrot.slane %v1470_v29, %v2726_v27 }
 0x343   :  { %v768_v16 = vpop.permute.xlu1 %767 }
 0x345   :  { %v1476_v54 = vpop.permute.xlu0 %1475 }
 0x347   :  { %v771_v36 = vpop.permute.xlu1 %770 }
 0x349   :  { %v789_v30 = vpop.permute.xlu0 %788 }
 0x34b   :  { %v780_v56 = vpop.permute.xlu1 %779 }
 0x34f   :  { %v783_v55 = vpop.permute.xlu1 %782 }
 0x353   :  { %v1458_v0 = vpop.permute.xlu1 %1457 }
 0x354   :  { %v1483_v35 = vrot.slane %v1458_v0, %v2726_v27  ;;  %v818_v0 = vrot.slane %v762_v4, %v2722_v21 }
 0x356   :  { %v1512_v37 = vsel %vm622_vm5, %v1487_v18, %v1483_v35  ;;  %v827_v18 = vrot.slane %v768_v16, %v2722_v21 }
 0x357   :  { %v1464_v46 = vpop.permute.xlu1 %1463 }
 0x358   :  { %v1491_v23 = vrot.slane %v1464_v46, %v2726_v27  ;;  %v800_v46 = vrot.slane %v750_v59, %v2722_v21  ;;  %v845_v59 = vrot.slane %v780_v56, %v2722_v21 }
 0x35a   :  { %v1513_v25 = vsel %vm624_vm6, %v1491_v23, %v1512_v37  ;;  %v796_v23 = vrot.slane %v747_v62, %v2726_v27  ;;  %v814_v37 = vrot.slane %v759_v47, %v2726_v27  ;;  %v1507_v62 = vrot.slane %v1476_v54, %v2726_v27 }
 0x35b   :  { %v1467_v42 = vpop.permute.xlu1 %1466  ;;  %v850_v47 = vrot.slane %v783_v55, %v2726_v27 }
 0x35c   :  { %v1495_v31 = vrot.slane %v1467_v42, %v2726_v27  ;;  %v810_v42 = vsel %vm557_vm4, %v809_v20, %v805_v39  ;;  %v801_v16 = vsel %vm557_vm4, %v800_v46, %v796_v23 }
 0x35e   :  { %v1514_v12 = vsel %vm626_vm7, %v1495_v31, %v1513_v25  ;;  %v832_v25 = vrot.slane %v771_v36, %v2726_v27  ;;  %v823_v31 = vrot.slane %v765_v52, %v2726_v27  ;;  %v854_v52 = vrot.slane %v786_v63, %v2722_v21 }
 0x35f   :  { %v1473_v38 = vpop.permute.xlu1 %1472  ;;  %v1515_v29 = vsel %vm628_vm8, %v1499_v7, %v1514_v12  ;;  %v841_v7 = vrot.slane %v777_v13, %v2726_v27  ;;  %v865_v36 = vsel %vm622_vm5, %v810_v42, %v801_v16 }
 0x360   :  { %v1503_v35 = vrot.slane %v1473_v38, %v2726_v27  ;;  %v819_v38 = vsel %vm557_vm4, %v818_v0, %v814_v37  ;;  %v828_v12 = vsel %vm557_vm4, %v827_v18, %v823_v31  ;;  %v837_v56 = vsel %vm557_vm4, %v836_v11, %v832_v25 }
 0x361   :  { %v866_v55 = vsel %vm624_vm6, %v819_v38, %v865_v36  ;;  %v846_v0 = vsel %vm557_vm4, %v845_v59, %v841_v7  ;;  %v855_v39 = vsel %vm557_vm4, %v854_v52, %v850_v47 }
 0x362   :  { %v1516_v43 = vsel %vm630_vm9, %v1503_v35, %v1515_v29  ;;  %v867_v13 = vsel %vm626_vm7, %v828_v12, %v866_v55  ;;  %v859_v35 = vrot.slane %v789_v30, %v2726_v27 }
 0x363   :  { %v1479_v4 = vpop.permute.xlu1 %1478  ;;  %v1517_v54 = vsel %vm632_vm10, %v1507_v62, %v1516_v43  ;;  %v868_v23 = vsel %vm628_vm8, %v837_v56, %v867_v13 }
 0x364   :  { %v1511_v20 = vrot.slane %v1479_v4, %v2726_v27  ;;  %v869_v25 = vsel %vm630_vm9, %v846_v0, %v868_v23 }
 0x365   :  { %v870_v31 = vsel %vm632_vm10, %v855_v39, %v869_v25 }
 0x366   :  { %v1518_v46 = vsel %vm634_vm11, %v1511_v20, %v1517_v54 }
 0x367   :  { %v792_v18 = vpop.permute.xlu1 %791  ;;  %v1520_v63 = vsel %vm1126_vm3, %v1518_v46, 0.0 }
 0x368   :  { %v863_v37 = vrot.slane %v792_v18, %v2722_v21  ;;  %1521 = vadd.xlane.f32.xlu0 %v1520_v63 }
 0x36a   :  { %v864_v29 = vsel %vm557_vm4, %v863_v37, %v859_v35 }
 0x36b   :  { %v871_v42 = vsel %vm634_vm11, %v864_v29, %v870_v31 }
 0x36c   :  { %v873_v59 = vsel %vm146_vm1, %v871_v42, 0.0 }
 0x36d   :  { %874 = vadd.xlane.f32.xlu1 %v873_v59 }
 0x3f5   :  { %v1522_v30 = vpop.xlane.xlu0 %1521 }
 0x3f6   :  { %v1527_v55 = vrot.slane %v1522_v30, %v2586_v3 }
 0x3fa   :  { %v3030_v43 = vpop.xlane.xlu1 %874 }
 0x3fb   :  { %v880_v27 = vrot.slane %v3030_v43, %v2586_v3  ;;  %v884_v21 = vrot.slane %v3030_v43, %v2667_v32  ;;  %v888_v11 = vrot.slane %v3030_v43, %v2841_v40  ;;  %v892_v38 = vrot.slane %v3030_v43, %v2819_v22 }
 0x3fc   :  { %v896_v47 = vrot.slane %v3030_v43, %v2824_v5  ;;  %v900_v12 = vrot.slane %v3030_v43, %v2833_v45 }
 0x3fd   :  { %2307 = vrcp.f32 %v880_v27  ;;  %v3372_v27 = vld [vmem:[#allocation14_spill] sm:$0xff] }
 0x3fe   :  { %2309 = vrcp.f32 %v884_v21 }
 0x3ff   :  { %2311 = vrcp.f32 %v888_v11 }
 0x400   :  { %2313 = vrcp.f32 %v892_v38 }
 0x401   :  { %2315 = vrcp.f32 %v896_v47  ;;  %v3373_v47 = vld [vmem:[#allocation2_spill] sm:$0xff] }
 0x402   :  { %2317 = vrcp.f32 %v900_v12 }
 0x407   :  { %v2308_v62 = vpop.eup %2307 }
 0x408   :  { %v919_v4 = vmul.f32 %v2308_v62, %v2873_v9  ;;  %v918_v16 = vmul.f32 %v2308_v62, %v2865_v41  ;;  %v2310_v7 = vpop.eup %2309  ;;  %v904_v9 = vrot.slane %v3030_v43, %v2845_v50 }
 0x409   :  { %v922_v20 = vmul.f32 %v2310_v7, %v2897_v6  ;;  %v921_v52 = vmul.f32 %v2310_v7, %v2886_v33  ;;  %v2312_v36 = vpop.eup %2311  ;;  %v1531_v33 = vrot.slane %v1522_v30, %v2667_v32  ;;  %v1543_v32 = vrot.slane %v1522_v30, %v2824_v5 }
 0x40a   :  { %948 = vperm.xlu0 %2210, %v919_v4   ;;  %943 = vperm.xlu1 %2209, %v918_v16   ;;  %v924_v41 = vmul.f32 %v2312_v36, %v2910_v34  ;;  %v925_v56 = vmul.f32 %v2312_v36, %v2922_v61  ;;  %v2314_v54 = vpop.eup %2313  ;;  %2319 = vrcp.f32 %v904_v9  ;;  %v1535_v34 = vrot.slane %v1522_v30, %v2841_v40 }
 0x40b   :  { %v928_v6 = vmul.f32 %v2314_v54, %v2931_v60  ;;  %v927_v0 = vmul.f32 %v2314_v54, %v2879_v17  ;;  %v2316_v46 = vpop.eup %2315  ;;  %2321 = vrcp.f32 %v1527_v55  ;;  %v1539_v61 = vrot.slane %v1522_v30, %v2819_v22 }
 0x40c   :  { %2323 = vrcp.f32 %v1531_v33  ;;  %v930_v13 = vmul.f32 %v2316_v46, %v2940_v2  ;;  %v931_v3 = vmul.f32 %v2316_v46, %v2892_v14  ;;  %v2318_v39 = vpop.eup %2317  ;;  %v1547_v17 = vrot.slane %v1522_v30, %v2833_v45 }
 0x40d   :  { %2325 = vrcp.f32 %v1535_v34  ;;  %v934_v60 = vmul.f32 %v2318_v39, %v2949_v19  ;;  %v933_v40 = vmul.f32 %v2318_v39, %v2905_v1  ;;  %v1551_v22 = vrot.slane %v1522_v30, %v2845_v50 }
 0x40e   :  { %958 = vperm.xlu0 %2210, %v922_v20   ;;  %953 = vperm.xlu1 %2209, %v921_v52   ;;  %2327 = vrcp.f32 %v1539_v61  ;;  %v1555_v14 = vrot.slane %v1522_v30, %v2883_v51  ;;  %v908_v45 = vrot.slane %v3030_v43, %v2883_v51  ;;  %v3371_v43 = vld [vmem:[#allocation15_spill] sm:$0xff]  ;;  %v3374_v4 = vunpack.c.h.bf16 %v3373_v47 }
 0x40f   :  { %2329 = vrcp.f32 %v1543_v32  ;;  %v3375_v7 = vunpack.c.l.bf16 %v3373_v47  ;;  %v3376_v30 = vld [vmem:[#allocation3_spill] sm:$0xff]  ;;  %v3379_v32 = vld [vmem:[#allocation5_spill] sm:$0xff] }
 0x410   :  { %2331 = vrcp.f32 %v1547_v17  ;;  %v3377_v9 = vunpack.c.h.bf16 %v3376_v30  ;;  %v3378_v54 = vunpack.c.l.bf16 %v3376_v30  ;;  %v3380_v17 = vunpack.c.l.bf16 %v3379_v32 }
 0x411   :  { %2333 = vrcp.f32 %v1551_v22 }
 0x412   :  { %963 = vperm.xlu0 %2210, %v924_v41   ;;  %968 = vperm.xlu1 %2209, %v925_v56   ;;  %2335 = vrcp.f32 %v1555_v14 }
 0x413   :  { %2337 = vrcp.f32 %v908_v45 }
 0x414   :  { %v2320_v18 = vpop.eup %2319 }
 0x415   :  { %v2322_v2 = vpop.eup %2321  ;;  %v936_v63 = vmul.f32 %v2320_v18, %v2958_v49  ;;  %v937_v5 = vmul.f32 %v2320_v18, %v2915_v48  ;;  %v3381_v18 = vunpack.c.h.bf16 %v3379_v32 }
 0x416   :  { %978 = vperm.xlu0 %2210, %v928_v6   ;;  %973 = vperm.xlu1 %2209, %v927_v0   ;;  %v2324_v35 = vpop.eup %2323  ;;  %v1565_v19 = vmul.f32 %v2322_v2, %v2962_v8 }
 0x417   :  { %v2326_v1 = vpop.eup %2325  ;;  %v1567_v50 = vmul.f32 %v2324_v35, %v2925_v26 }
 0x418   :  { %v2328_v23 = vpop.eup %2327  ;;  %v1569_v48 = vmul.f32 %v2326_v1, %v2967_v44 }
 0x419   :  { %v2330_v49 = vpop.eup %2329  ;;  %v1571_v37 = vmul.f32 %v2328_v23, %v2970_v24  ;;  %v3382_v23 = vld [vmem:[#allocation7_spill] sm:$0xff] }
 0x41a   :  { %983 = vperm.xlu0 %2210, %v930_v13   ;;  %988 = vperm.xlu1 %2209, %v931_v3   ;;  %v2332_v25 = vpop.eup %2331  ;;  %v1573_v51 = vmul.f32 %v2330_v49, %v2934_v53  ;;  %v1686_v53 = vld [vmem:[%s3302_s6 + $0x10] sm:$0xff]  ;;  %v3383_v49 = vunpack.c.h.bf16 %v3382_v23 }
 0x41b   :  { %v2334_v29 = vpop.eup %2333  ;;  %v1575_v31 = vmul.f32 %v2332_v25, %v2973_v15  ;;  %2179 = vmatpush3.msra.mxu0 %v1686_v53  ;;  %v3370_v15 = vmov 0.0|0.0   ;;  %v3384_v25 = vunpack.c.l.bf16 %v3382_v23 }
 0x41c   :  { %v2336_v8 = vpop.eup %2335  ;;  %v1577_v26 = vmul.f32 %v2334_v29, %v2943_v58  ;;  %2200 = vmatprep.subr.bf16.mxu0 %v3370_v15  ;;  %v1874_v58 = vadd.s32 4294967256, %v3371_v43 }
 0x41d   :  { %v1579_v42 = vmul.f32 %v2336_v8, %v2976_v28  ;;  %v2338_v59 = vpop.eup %2337  ;;  %v1869_v28 = vadd.s32 4294967264, %v3371_v43 }
 0x41e   :  { %998 = vperm.xlu0 %2210, %v934_v60   ;;  %993 = vperm.xlu1 %2209, %v933_v40   ;;  %v939_v44 = vmul.f32 %v2338_v59, %v2952_v57  ;;  %v940_v24 = vmul.f32 %v2338_v59, %v2979_v10  ;;  %v3087_v21 = vsub.s32 %v1874_v58, %v3372_v27  ;;  %v3385_v58 = vld [vmem:[#allocation9_spill] sm:$0xff] }
 0x41f   :  { %v3090_v57 = vsub.s32 %v1869_v28, %v3372_v27  ;;  %v3386_v28 = vunpack.c.l.bf16 %v3385_v58 }
 0x422   :  { %1003 = vperm.xlu0 %2210, %v936_v63   ;;  %1008 = vperm.xlu1 %2209, %v937_v5  }
 0x426   :  { %1582 = vperm.xlu0 %2210, %v1565_v19   ;;  %1587 = vperm.xlu1 %2209, %v1567_v50  }
 0x42a   :  { %1592 = vperm.xlu0 %2210, %v1569_v48   ;;  %1597 = vperm.xlu1 %2209, %v1571_v37  }
 0x42e   :  { %1602 = vperm.xlu0 %2210, %v1573_v51   ;;  %1607 = vperm.xlu1 %2209, %v1575_v31  }
 0x432   :  { %1612 = vperm.xlu0 %2210, %v1577_v26   ;;  %1617 = vperm.xlu1 %2209, %v1579_v42  }
 0x436   :  { %1013 = vperm.xlu0 %2210, %v939_v44   ;;  %1018 = vperm.xlu1 %2209, %v940_v24  }
 0x489   :  { %v949_v10 = vpop.permute.xlu0 %948  ;;  %v944_v11 = vpop.permute.xlu1 %943 }
 0x48a   :  { %v1878_v38 = vrot.slane %v949_v10, %v3087_v21  ;;  %v1873_v62 = vrot.slane %v944_v11, %v3090_v57  ;;  %v1022_v16 = vmul.f32 %v3374_v4, %v949_v10  ;;  %v1021_v12 = vmul.f32 %v3375_v7, %v944_v11 }
 0x48c   :  { %v1880_v20 = vsel %vm1879_vm12, %v1878_v38, %v1873_v62  ;;  %v1038_v6 = vsel %vm146_vm1, %v1022_v16, 0.0  ;;  %v1037_v0 = vsel %vm146_vm1, %v1021_v12, 0.0  ;;  %v3387_v38 = vunpack.c.h.bf16 %v3385_v58 }
 0x48d   :  { %v959_v52 = vpop.permute.xlu0 %958  ;;  %v954_v36 = vpop.permute.xlu1 %953  ;;  %v1039_v2 = vadd.f32 %v1038_v6, %v1037_v0 }
 0x48e   :  { %v1024_v41 = vmul.f32 %v3377_v9, %v959_v52  ;;  %v1888_v56 = vrot.slane %v959_v52, %v3087_v21  ;;  %v1023_v55 = vmul.f32 %v3378_v54, %v954_v36  ;;  %v1884_v33 = vrot.slane %v954_v36, %v3090_v57 }
 0x48f   :  { %v1040_v31 = vrot.slane %v1039_v2, 4  ;;  %v1954_v9 = vadd.s32 4294967248, %v3371_v43 }
 0x490   :  { %v1047_v46 = vsel %vm146_vm1, %v1024_v41, 0.0  ;;  %v1046_v34 = vsel %vm146_vm1, %v1023_v55, 0.0  ;;  %v1889_v61 = vsel %vm1879_vm12, %v1888_v56, %v1884_v33  ;;  %v3388_v56 = vld [vmem:[#allocation11_spill] sm:$0xff] }
 0x491   :  { %v1944_v13 = vsel %vm622_vm5, %v1889_v61, %v1880_v20  ;;  %v964_v3 = vpop.permute.xlu0 %963  ;;  %v969_v39 = vpop.permute.xlu1 %968  ;;  %v1048_v63 = vadd.f32 %v1047_v46, %v1046_v34  ;;  %v1041_v47 = vadd.f32 %v1040_v31, %v1039_v2  ;;  %v3389_v54 = vunpack.c.h.bf16 %v3388_v56 }
 0x492   :  { %v1025_v60 = vmul.f32 %v3380_v17, %v964_v3  ;;  %v1893_v40 = vrot.slane %v964_v3, %v3090_v57  ;;  %v1026_v22 = vmul.f32 %v3381_v18, %v969_v39  ;;  %v1897_v14 = vrot.slane %v969_v39, %v3087_v21 }
 0x493   :  { %v1049_v8 = vrot.slane %v1048_v63, 4  ;;  %v3390_v6 = vunpack.c.l.bf16 %v3388_v56  ;;  %v1042_v46 = vrot.slane %v1041_v47, 2  ;;  %v3151_v18 = vsub.s32 %v1954_v9, %v3372_v27  ;;  %v3397_v9 = vld [vmem:[#allocation6_spill] sm:$0xff] }
 0x494   :  { %v1898_v5 = vsel %vm1879_vm12, %v1897_v14, %v1893_v40  ;;  %v1055_v35 = vsel %vm146_vm1, %v1025_v60, 0.0  ;;  %v1056_v45 = vsel %vm146_vm1, %v1026_v22, 0.0  ;;  %v3391_v14 = vld [vmem:[#allocation12_spill] sm:$0xff] }
 0x495   :  { %v1945_v1 = vsel %vm624_vm6, %v1898_v5, %v1944_v13  ;;  %v979_v19 = vpop.permute.xlu0 %978  ;;  %v974_v50 = vpop.permute.xlu1 %973  ;;  %v1057_v44 = vadd.f32 %v1056_v45, %v1055_v35  ;;  %v1050_v4 = vadd.f32 %v1049_v8, %v1048_v63  ;;  %v3392_v2 = vunpack.c.l.bf16 %v3391_v14 }
 0x496   :  { %v1028_v48 = vmul.f32 %v3383_v49, %v979_v19  ;;  %v1906_v37 = vrot.slane %v979_v19, %v3087_v21  ;;  %v1027_v29 = vmul.f32 %v3384_v25, %v974_v50  ;;  %v1902_v51 = vrot.slane %v974_v50, %v3090_v57 }
 0x497   :  { %v1058_v12 = vrot.slane %v1057_v44, 4  ;;  %v1051_v34 = vrot.slane %v1050_v4, 2  ;;  %v3393_v35 = vunpack.c.h.bf16 %v3391_v14 }
 0x498   :  { %v1065_v26 = vsel %vm146_vm1, %v1028_v48, 0.0  ;;  %v1064_v42 = vsel %vm146_vm1, %v1027_v29, 0.0  ;;  %v1907_v59 = vsel %vm1879_vm12, %v1906_v37, %v1902_v51 }
 0x499   :  { %v984_v24 = vpop.permute.xlu0 %983  ;;  %v989_v53 = vpop.permute.xlu1 %988  ;;  %v1946_v15 = vsel %vm626_vm7, %v1907_v59, %v1945_v1  ;;  %v1066_v16 = vadd.f32 %v1065_v26, %v1064_v42  ;;  %v1059_v32 = vadd.f32 %v1058_v12, %v1057_v44  ;;  %v3159_v1 = vadd.f32 %v1042_v46, %v1041_v47  ;;  %v3394_v26 = vld [vmem:[#allocation4_spill] sm:$0xff] }
 0x49a   :  { %v1029_v10 = vmul.f32 %v3386_v28, %v984_v24  ;;  %v1911_v11 = vrot.slane %v984_v24, %v3090_v57  ;;  %v1030_v62 = vmul.f32 %v3387_v38, %v989_v53  ;;  %v1915_v7 = vrot.slane %v989_v53, %v3087_v21 }
 0x49b   :  { %v1067_v61 = vrot.slane %v1066_v16, 4  ;;  %v3161_v23 = vadd.f32 %v1051_v34, %v1050_v4  ;;  %v1060_v48 = vrot.slane %v1059_v32, 2  ;;  %v3395_v42 = vunpack.c.l.bf16 %v3394_v26 }
 0x49c   :  { %v1073_v20 = vsel %vm146_vm1, %v1029_v10, 0.0  ;;  %v1074_v52 = vsel %vm146_vm1, %v1030_v62, 0.0  ;;  %v1916_v41 = vsel %vm1879_vm12, %v1915_v7, %v1911_v11  ;;  %v3396_v24 = vunpack.c.h.bf16 %v3394_v26 }
 0x49d   :  { %v999_v36 = vpop.permute.xlu0 %998  ;;  %v994_v30 = vpop.permute.xlu1 %993  ;;  %v1947_v13 = vsel %vm628_vm8, %v1916_v41, %v1946_v15  ;;  %v1075_v17 = vadd.f32 %v1074_v52, %v1073_v20  ;;  %v1068_v19 = vadd.f32 %v1067_v61, %v1066_v16  ;;  %v1044_v15 = vrot.slane %v3159_v1, 1 }
 0x49e   :  { %v1032_v55 = vmul.f32 %v3389_v54, %v999_v36  ;;  %v1924_v33 = vrot.slane %v999_v36, %v3087_v21  ;;  %v1031_v0 = vmul.f32 %v3390_v6, %v994_v30  ;;  %v1920_v43 = vrot.slane %v994_v30, %v3090_v57 }
 0x49f   :  { %v1076_v37 = vrot.slane %v1075_v17, 4  ;;  %v1069_v58 = vrot.slane %v1068_v19, 2  ;;  %v1053_v11 = vrot.slane %v3161_v23, 1  ;;  %v3181_v4 = vadd.f32 %v1060_v48, %v1059_v32 }
 0x4a0   :  { %v1083_v3 = vsel %vm146_vm1, %v1032_v55, 0.0  ;;  %v1082_v39 = vsel %vm146_vm1, %v1031_v0, 0.0  ;;  %v1925_v22 = vsel %vm1879_vm12, %v1924_v33, %v1920_v43  ;;  %v3398_v41 = vunpack.c.l.bf16 %v3397_v9 }
 0x4a1   :  { %v1004_v60 = vpop.permute.xlu0 %1003  ;;  %v1009_v40 = vpop.permute.xlu1 %1008  ;;  %v1084_v50 = vadd.f32 %v1083_v3, %v1082_v39  ;;  %v1948_v49 = vsel %vm630_vm9, %v1925_v22, %v1947_v13  ;;  %v3183_v16 = vadd.f32 %v1076_v37, %v1075_v17  ;;  %v3189_v55 = vadd.f32 %v1069_v58, %v1068_v19 }
 0x4a2   :  { %v1033_v63 = vmul.f32 %v3392_v2, %v1004_v60  ;;  %v1929_v5 = vrot.slane %v1004_v60, %v3090_v57  ;;  %v1034_v45 = vmul.f32 %v3393_v35, %v1009_v40  ;;  %v1933_v27 = vrot.slane %v1009_v40, %v3087_v21 }
 0x4a3   :  { %v1085_v28 = vrot.slane %v1084_v50, 4  ;;  %v3399_v0 = vunpack.c.h.bf16 %v3397_v9  ;;  %v1078_v39 = vrot.slane %v3183_v16, 2 }
 0x4a4   :  { %v1091_v25 = vsel %vm146_vm1, %v1033_v63, 0.0  ;;  %v1092_v29 = vsel %vm146_vm1, %v1034_v45, 0.0  ;;  %v1934_v8 = vsel %vm1879_vm12, %v1933_v27, %v1929_v5  ;;  %v3400_v63 = vld [vmem:[#allocation8_spill] sm:$0xff] }
 0x4a5   :  { %v1583_v51 = vpop.permute.xlu0 %1582  ;;  %v1588_v31 = vpop.permute.xlu1 %1587  ;;  %v3175_v10 = vsel %vm632_vm10, %v1934_v8, %v1948_v49  ;;  %v1093_v7 = vadd.f32 %v1092_v29, %v1091_v25  ;;  %v3191_v33 = vadd.f32 %v1085_v28, %v1084_v50  ;;  %v3401_v5 = vunpack.c.l.bf16 %v3400_v63 }
 0x4a6   :  { %v1620_v59 = vmul.f32 %v3395_v42, %v1583_v51  ;;  %v1958_v44 = vrot.slane %v1583_v51, %v3151_v18  ;;  %v1621_v53 = vmul.f32 %v3396_v24, %v1588_v31  ;;  %v1962_v47 = vrot.slane %v1588_v31, %v3151_v18 }
 0x4a7   :  { %v1094_v43 = vrot.slane %v1093_v7, 4  ;;  %v1087_v45 = vrot.slane %v3191_v33, 2  ;;  %v3402_v25 = vunpack.c.h.bf16 %v3400_v63 }
 0x4a8   :  { %v1628_v38 = vsel %vm1126_vm3, %v1620_v59, 0.0  ;;  %v1635_v62 = vsel %vm1126_vm3, %v1621_v53, 0.0  ;;  %v1987_v30 = vsel %vm622_vm5, %v1962_v47, %v1958_v44 }
 0x4a9   :  { %v1629_v12 = vrot.slane %v1628_v38, 4  ;;  %v1593_v20 = vpop.permute.xlu0 %1592  ;;  %v1598_v52 = vpop.permute.xlu1 %1597  ;;  %v1636_v36 = vrot.slane %v1635_v62, 4  ;;  %v3208_v51 = vadd.f32 %v1094_v43, %v1093_v7 }
 0x4aa   :  { %v1622_v56 = vmul.f32 %v3398_v41, %v1593_v20  ;;  %v1966_v54 = vrot.slane %v1593_v20, %v3151_v18  ;;  %v1623_v46 = vmul.f32 %v3399_v0, %v1598_v52  ;;  %v1970_v3 = vrot.slane %v1598_v52, %v3151_v18  ;;  %v3403_v52 = vld [vmem:[#allocation10_spill] sm:$0xff] }
 0x4ab   :  { %v1630_v6 = vadd.f32 %v1629_v12, %v1628_v38  ;;  %v1637_v34 = vadd.f32 %v1636_v36, %v1635_v62  ;;  %v3404_v36 = vunpack.c.l.bf16 %v3403_v52 }
 0x4ac   :  { %v1642_v61 = vsel %vm1126_vm3, %v1622_v56, 0.0  ;;  %v1988_v13 = vsel %vm624_vm6, %v1966_v54, %v1987_v30  ;;  %v1649_v14 = vsel %vm1126_vm3, %v1623_v46, 0.0 }
 0x4ad   :  { %v1631_v32 = vrot.slane %v1630_v6, 2  ;;  %v1643_v17 = vrot.slane %v1642_v61, 4  ;;  %v1603_v60 = vpop.permute.xlu0 %1602  ;;  %v1608_v40 = vpop.permute.xlu1 %1607  ;;  %v1638_v22 = vrot.slane %v1637_v34, 2  ;;  %v1989_v2 = vsel %vm626_vm7, %v1970_v3, %v1988_v13 }
 0x4ae   :  { %v1624_v35 = vmul.f32 %v3401_v5, %v1603_v60  ;;  %v1650_v49 = vrot.slane %v1649_v14, 4  ;;  %v1974_v37 = vrot.slane %v1603_v60, %v3151_v18  ;;  %v1625_v29 = vmul.f32 %v3402_v25, %v1608_v40 }
 0x4af   :  { %v1632_v19 = vadd.f32 %v1631_v32, %v1630_v6  ;;  %v1644_v50 = vadd.f32 %v1643_v17, %v1642_v61  ;;  %v1639_v27 = vadd.f32 %v1638_v22, %v1637_v34  ;;  %v1978_v7 = vrot.slane %v1608_v40, %v3151_v18 }
 0x4b0   :  { %v1656_v48 = vsel %vm1126_vm3, %v1624_v35, 0.0  ;;  %v1651_v26 = vadd.f32 %v1650_v49, %v1649_v14  ;;  %v1990_v24 = vsel %vm628_vm8, %v1974_v37, %v1989_v2  ;;  %v1663_v53 = vsel %vm1126_vm3, %v1625_v29, 0.0 }
 0x4b1   :  { %v1633_v31 = vrot.slane %v1632_v19, 1  ;;  %v1645_v8 = vrot.slane %v1644_v50, 2  ;;  %v1613_v42 = vpop.permute.xlu0 %1612  ;;  %v1640_v59 = vrot.slane %v1639_v27, 1  ;;  %v1657_v44 = vrot.slane %v1656_v48, 4  ;;  %v1618_v47 = vpop.permute.xlu1 %1617 }
 0x4b2   :  { %v1652_v38 = vrot.slane %v1651_v26, 2  ;;  %v1664_v62 = vrot.slane %v1663_v53, 4  ;;  %v1626_v30 = vmul.f32 %v3404_v36, %v1613_v42  ;;  %v1982_v54 = vrot.slane %v1613_v42, %v3151_v18 }
 0x4b3   :  { %v1634_v58 = vadd.f32 %v1633_v31, %v1632_v19  ;;  %v1646_v28 = vadd.f32 %v1645_v8, %v1644_v50  ;;  %v1641_v12 = vadd.f32 %v1640_v59, %v1639_v27  ;;  %v1658_v20 = vadd.f32 %v1657_v44, %v1656_v48  ;;  %v3406_v48 = vld [vmem:[#allocation13_spill] sm:$0xff] }
 0x4b4   :  { %v1653_v41 = vadd.f32 %v1652_v38, %v1651_v26  ;;  %v1665_v56 = vadd.f32 %v1664_v62, %v1663_v53  ;;  %v1096_v6 = vrot.slane %v3208_v51, 2  ;;  %v1991_v46 = vsel %vm630_vm9, %v1978_v7, %v1990_v24 }
 0x4b5   :  { %v1647_v9 = vrot.slane %v1646_v28, 1  ;;  %v1659_v0 = vrot.slane %v1658_v20, 2  ;;  %v1670_v34 = vsel %vm1126_vm3, %v1626_v30, 0.0  ;;  %v1014_v32 = vpop.permute.xlu0 %1013  ;;  %v1992_v60 = vsel %vm632_vm10, %v1982_v54, %v1991_v46  ;;  %v1019_v19 = vpop.permute.xlu1 %1018  ;;  %v1685_v54 = vld [vmem:[%s3302_s6 + $0x8] sm:$0xff] }
 0x4b6   :  { %v1654_v13 = vrot.slane %v1653_v41, 1  ;;  %v1666_v3 = vrot.slane %v1665_v56, 2  ;;  %v1671_v43 = vrot.slane %v1670_v34, 4  ;;  %v3405_v40 = vunpack.c.h.bf16 %v3403_v52 }
 0x4b7   :  { %v1648_v61 = vadd.f32 %v1647_v9, %v1646_v28  ;;  %v1660_v17 = vadd.f32 %v1659_v0, %v1658_v20  ;;  %v1986_v14 = vrot.slane %v1618_v47, %v3151_v18  ;;  %v1695_v2 = vsel %vm622_vm5, %v1641_v12, %v1634_v58 }
 0x4b8   :  { %v1627_v22 = vmul.f32 %v3405_v40, %v1618_v47  ;;  %v1655_v63 = vadd.f32 %v1654_v13, %v1653_v41  ;;  %v1667_v5 = vadd.f32 %v1666_v3, %v1665_v56  ;;  %v1672_v35 = vadd.f32 %v1671_v43, %v1670_v34  ;;  %v1684_v56 = vld [vmem:[%s3302_s6] sm:$0xff] }
 0x4b9   :  { %v1661_v50 = vrot.slane %v1660_v17, 1  ;;  %v3226_v27 = vsel %vm634_vm11, %v1986_v14, %v1992_v60  ;;  %v3407_v37 = vunpack.c.l.bf16 %v3406_v48  ;;  %v1696_v29 = vsel %vm624_vm6, %v1648_v61, %v1695_v2 }
 0x4ba   :  { %v1677_v49 = vsel %vm1126_vm3, %v1627_v22, 0.0  ;;  %v1668_v31 = vrot.slane %v1667_v5, 1  ;;  %v1673_v8 = vrot.slane %v1672_v35, 2  ;;  %v1938_v59 = vrot.slane %v1014_v32, %v3090_v57 }
 0x4bb   :  { %v1035_v25 = vmul.f32 %v3407_v37, %v1014_v32  ;;  %v1678_v18 = vrot.slane %v1677_v49, 4  ;;  %v1662_v26 = vadd.f32 %v1661_v50, %v1660_v17  ;;  %v3408_v44 = vunpack.c.h.bf16 %v3406_v48 }
 0x4bc   :  { %v1079_v53 = vadd.f32 %v1078_v39, %v3183_v16  ;;  %v1674_v58 = vadd.f32 %v1673_v8, %v1672_v35  ;;  %v1942_v38 = vrot.slane %v1019_v19, %v3087_v21  ;;  %v1088_v62 = vadd.f32 %v1087_v45, %v3191_v33 }
 0x4bd   :  { %v1100_v42 = vsel %vm146_vm1, %v1035_v25, 0.0  ;;  %v1036_v24 = vmul.f32 %v3408_v44, %v1019_v19  ;;  %v1679_v28 = vadd.f32 %v1678_v18, %v1677_v49  ;;  %v1697_v47 = vsel %vm626_vm7, %v1655_v63, %v1696_v29  ;;  %v2029_v29 = vld [vmem:[%s3302_s6 + $0x18] ss:$0 sm:$0xff] }
 0x4be   :  { %v1669_v12 = vadd.f32 %v1668_v31, %v1667_v5  ;;  %v1675_v20 = vrot.slane %v1674_v58, 1  ;;  %v1943_v36 = vsel %vm1879_vm12, %v1942_v38, %v1938_v59  ;;  %v1062_v16 = vrot.slane %v3181_v4, 1 }
 0x4bf   :  { %v1101_v57 = vsel %vm146_vm1, %v1036_v24, 0.0  ;;  %v1680_v7 = vrot.slane %v1679_v28, 2  ;;  %v1097_v39 = vadd.f32 %v1096_v6, %v3208_v51  ;;  %v1698_v21 = vsel %vm628_vm8, %v1662_v26, %v1697_v47 }
 0x4c0   :  { %v1102_v52 = vadd.f32 %v1101_v57, %v1100_v42  ;;  %v1950_v30 = vsel %vm634_vm11, %v1943_v36, %v3175_v10  ;;  %v1071_v33 = vrot.slane %v3189_v55, 1  ;;  %v1676_v45 = vadd.f32 %v1675_v20, %v1674_v58 }
 0x4c1   :  { %v1681_v9 = vadd.f32 %v1680_v7, %v1679_v28  ;;  %v1054_v51 = vadd.f32 %v1053_v11, %v3161_v23  ;;  %v1080_v6 = vrot.slane %v1079_v53, 1  ;;  %v1089_v0 = vrot.slane %v1088_v62, 1 }
 0x4c2   :  { %v1103_v41 = vrot.slane %v1102_v52, 4  ;;  %v1699_v34 = vsel %vm630_vm9, %v1669_v12, %v1698_v21  ;;  %v1063_v61 = vadd.f32 %v1062_v16, %v3181_v4  ;;  %v1098_v13 = vrot.slane %v1097_v39, 1 }
 0x4c3   :  { %v1682_v10 = vrot.slane %v1681_v9, 1  ;;  %v1700_v3 = vsel %vm632_vm10, %v1676_v45, %v1699_v34  ;;  %v2201_v43 = vpack.c.bf16 %v1685_v54, %v1684_v56  ;;  %v1045_v32 = vadd.f32 %v1044_v15, %v3159_v1  ;;  %v2339_v1 = vld [vmem:[%s3298_s7] sm:$0xff] }
 0x4c4   :  { %v1104_v46 = vadd.f32 %v1103_v41, %v1102_v52  ;;  %v1072_v17 = vadd.f32 %v1071_v33, %v3189_v55  ;;  %v1081_v11 = vadd.f32 %v1080_v6, %v1079_v53  ;;  %v1090_v22 = vadd.f32 %v1089_v0, %v1088_v62 }
 0x4c5   :  { %v1683_v60 = vadd.f32 %v1682_v10, %v1681_v9  ;;  %v1782_v40 = vsel %vm622_vm5, %v1054_v51, %v1045_v32  ;;  %v1099_v63 = vadd.f32 %v1098_v13, %v1097_v39 }
 0x4c6   :  { %v1105_v23 = vrot.slane %v1104_v46, 2  ;;  %v1783_v4 = vsel %vm624_vm6, %v1063_v61, %v1782_v40 }
 0x4c7   :  { %v1701_v2 = vsel %vm634_vm11, %v1683_v60, %v1700_v3  ;;  %v1784_v15 = vsel %vm626_vm7, %v1072_v17, %v1783_v4 }
 0x4c8   :  { %v1106_v14 = vadd.f32 %v1105_v23, %v1104_v46  ;;  %2181 = vmatmul.mubr.msk.f32.vlgmr.msra.gmra.mrb[10].mxu0 %vm1126_vm3, %v1701_v2  ;;  %v1785_v55 = vsel %vm628_vm8, %v1081_v11, %v1784_v15 }
 0x4c9   :  { %2202 = vmatpush3.bf16.msra.mxu0 %v2201_v43  ;;  %2187 = vmatprep.mubr.msk.f32.mxu0 %vm2341_vm0, %v2339_v1  ;;  %v1786_v19 = vsel %vm630_vm9, %v1090_v22, %v1785_v55 }
 0x4ca   :  { %v1107_v5 = vrot.slane %v1106_v14, 1  ;;  %v1787_v50 = vsel %vm632_vm10, %v1099_v63, %v1786_v19 }
 0x4cc   :  { %v1108_v35 = vadd.f32 %v1107_v5, %v1106_v14 }
 0x4ce   :  { %v1788_v49 = vsel %vm634_vm11, %v1108_v35, %v1787_v50 }
 0x4cf   :  { %2188 = vmatmul.mubr.msk.f32.vlgmr.msra.gmra.mrb[12].mxu0 %vm146_vm1, %v1788_v49 }
 0x59b   :  { %v1770_v48 = vpop.f32.mrb[10].mxu0 }
 0x59c   :  { %v2182_v37 = vpop.f32.mrb[11].mxu0 }
 0x5a2   :  { %v1857_v25 = vpop.f32.mrb[12].mxu0 }
 0x5a3   :  { %v1858_v31 = vadd.f32 %v1857_v25, %v1770_v48  ;;  %v2189_v8 = vpop.f32.mrb[13].mxu0 }
 0x5a5   :  { %v1866_v18 = vadd.f32 %v2029_v29, %v1858_v31 }
 0x5a7   :  { %1868 = vst.msk [vmem:[%s3298_s7] sm:$0xff] %vm37_vm2, %v1866_v18 }
 0x5a8   :  { %1953 = vst.msk [vmem:[%s3298_s7] sm:$0xff] %vm1952_vm13, %v1950_v30 }
 0x5a9   :  { %1996 = vst.msk [vmem:[%s3298_s7] sm:$0xff] %vm1995_vm14, %v3226_v27 }

</bundles_post_ra>
